<compile_context>
chip_gen: v6e
topology: v6e:2x2x1
jax: 0.10.0
libtpu: 0.0.40
codegen_flags: <defaults>
</compile_context>

<pallas_src>
import jax
import jax.numpy as jnp
from jax import lax
from jax.experimental import pallas as pl
from jax.experimental.pallas import tpu as pltpu

# ---- model hyperparameters (hardcoded in the PyTorch module) ----
ENC_EMBED = 30
DEC_EMBED = 30
ENC_HID = 64
DEC_HID = 2 * ENC_HID      # 128


def _lstm_gates(z, c, hid):
    """PyTorch LSTM gate order: i, f, g, o.  All math in f32."""
    i = jax.nn.sigmoid(z[:, 0 * hid:1 * hid])
    f = jax.nn.sigmoid(z[:, 1 * hid:2 * hid])
    g = jnp.tanh(z[:, 2 * hid:3 * hid])
    o = jax.nn.sigmoid(z[:, 3 * hid:4 * hid])
    c_new = f * c + i * g
    h_new = o * jnp.tanh(c_new)
    return h_new, c_new


# =====================================================================
# Encoder: bidirectional LSTM, both directions fused into one time loop.
# Input projections hoisted; output emitted as one dense bf16 slab.
# =====================================================================
def _encoder_kernel(x_ref, wih_fb_ref, whh_f_ref, whh_b_ref, b_fb_ref,
                    out_ref, hfin_ref, cfin_ref, zx_ref, ys_ref):
    S, B = x_ref.shape[0], x_ref.shape[1]
    E = x_ref.shape[2]
    H = ENC_HID
    bf = jnp.bfloat16

    # Hoisted: x @ [W_ih_fwd | W_ih_bwd] for all timesteps as ONE matmul (+ bias).
    zx = jnp.dot(x_ref[...].reshape(S * B, E).astype(bf), wih_fb_ref[...],
                 preferred_element_type=jnp.float32)
    zx_ref[...] = (zx + b_fb_ref[...]).reshape(S, B, 8 * H)

    whh_f = whh_f_ref[...]
    whh_b = whh_b_ref[...]

    def cell(zx_t, h, c, whh):
        # Only the K=64 recurrent matmul remains on the serial chain.
        z = zx_t + jnp.dot(h.astype(bf), whh, preferred_element_type=jnp.float32)
        return _lstm_gates(z, c, H)

    def body(t, carry):
        hf, cf, hb, cb = carry
        s = S - 1 - t
        # Two independent dependency chains per iteration (fwd @ t, bwd @ S-1-t).
        hf, cf = cell(zx_ref[t, :, 0:4 * H], hf, cf, whh_f)
        hb, cb = cell(zx_ref[s, :, 4 * H:8 * H], hb, cb, whh_b)
        ys_ref[t, :, 0:H] = hf           # fwd half of timestep t   (f32 scratch)
        ys_ref[s, :, H:2 * H] = hb       # bwd half of timestep S-1-t
        return hf, cf, hb, cb

    zeros = jnp.zeros((B, H), jnp.float32)
    unroll = True if S <= 16 else 4
    hf, cf, hb, cb = lax.fori_loop(0, S, body, (zeros, zeros, zeros, zeros),
                                   unroll=unroll)

    # One dense, lane-full bf16 store of the whole output slab.
    out_ref[...] = ys_ref[...].astype(out_ref.dtype)

    # Final states, PyTorch layout (dir, batch, hidden).
    hfin_ref[0] = hf
    hfin_ref[1] = hb
    cfin_ref[0] = cf
    cfin_ref[1] = cb


def run_encoder(enc_emb, params):
    S, B, E = enc_emb.shape
    H = ENC_HID
    full = lambda shape: pl.BlockSpec(shape, lambda i, _s=shape: (0,) * len(_s))

    grid_spec = pltpu.PrefetchScalarGridSpec(
        num_scalar_prefetch=0,
        grid=(1,),
        in_specs=[
            full((S, B, E)),
            full((E, 8 * H)),                 # [W_ih_fwd | W_ih_bwd]^T
            full((H, 4 * H)), full((H, 4 * H)),
            full((1, 8 * H)),                 # combined biases, both directions
        ],
        out_specs=[
            full((S, B, 2 * H)),
            full((2, B, H)),
            full((2, B, H)),
        ],
        scratch_shapes=[
            pltpu.VMEM((S, B, 8 * H), jnp.float32),   # hoisted input projections
            pltpu.VMEM((S, B, 2 * H), jnp.float32),   # output staging (dense final store)
        ],
    )
    out_shape = (
        jax.ShapeDtypeStruct((S, B, 2 * H), jnp.bfloat16),  # [fwd | bwd] hidden states
        jax.ShapeDtypeStruct((2, B, H), jnp.float32),        # final h (dir, B, H)
        jax.ShapeDtypeStruct((2, B, H), jnp.float32),        # final c (dir, B, H)
    )
    return pl.pallas_call(
        _encoder_kernel,
        out_shape=out_shape,
        grid_spec=grid_spec,
        compiler_params=pltpu.CompilerParams(
            dimension_semantics=("arbitrary",),
            vmem_limit_bytes=32 * 1024 * 1024),
    )(enc_emb, params["enc_wih_fb"], params["enc_whh_f"], params["enc_whh_b"],
      params["enc_b_fb"])


# =====================================================================
# Decoder: single launch, in-kernel loop over target tokens.
# Embedding projection hoisted before the loop; generator + log-softmax
# hoisted after it.  Per-step work: attention, wo/tanh, LSTMCell (K=256).
# =====================================================================
def _decoder_kernel(sys_ref, emb_ref, h0_ref, c0_ref,
                    wi_ref, wo_ref, w_ch_ref, wemb_ref, b_ref,
                    gw_ref, gb_ref, out_ref, zemb_ref, hall_ref):
    Tm1, B, E = emb_ref.shape
    DH = DEC_HID
    V = gw_ref.shape[1]
    bf = jnp.bfloat16

    # Loop-invariant loads, hoisted out of the time loop.
    sys = sys_ref[...]                        # (S, B, DH) bf16
    wi = wi_ref[...]                          # (DH, DH)   bf16
    wo = wo_ref[...]                          # (2DH, DH)  bf16
    w_ch = w_ch_ref[...]                      # (2DH, 4DH) bf16

    # Hoisted: embedding input projection (+ combined LSTMCell bias) for ALL steps.
    ze = jnp.dot(emb_ref[...].reshape(Tm1 * B, E).astype(bf), wemb_ref[...],
                 preferred_element_type=jnp.float32)
    zemb_ref[...] = (ze + b_ref[...]).reshape(Tm1, B, 4 * DH)

    def body(t, carry):
        h, c = carry
        h_b = h.astype(bf)

        # attention: score = softmax_over_seq( sum(sys * wi(h), dim=2) )
        wht = jnp.dot(h_b, wi, preferred_element_type=jnp.float32)      # (B, DH) f32
        score = jnp.sum(sys * wht[None, :, :], axis=2)                  # (S, B)  f32
        score = score - jnp.max(score, axis=0, keepdims=True)
        e = jnp.exp(score)
        attn = e * pl.reciprocal(jnp.sum(e, axis=0, keepdims=True), approx=True)
        st = jnp.sum(attn[:, :, None] * sys, axis=0)                    # (B, DH) f32

        # ct = tanh(wo([st, h]))  -- single K=256 matmul
        sh = jnp.concatenate([st.astype(bf), h_b], axis=1)              # (B, 2DH)
        ct = jnp.tanh(jnp.dot(sh, wo, preferred_element_type=jnp.float32))

        # LSTMCell pre-activation: [ct | h] @ W (K=256) + hoisted (emb proj + bias)
        ch = jnp.concatenate([ct.astype(bf), h_b], axis=1)              # (B, 2DH)
        z = jnp.dot(ch, w_ch, preferred_element_type=jnp.float32) + zemb_ref[t]
        h_new, c_new = _lstm_gates(z, c, DH)

        hall_ref[t] = h_new     # generator consumes this after the loop
        return h_new, c_new

    unroll = True if Tm1 <= 16 else 4
    lax.fori_loop(0, Tm1, body, (h0_ref[...], c0_ref[...]), unroll=unroll)

    # Hoisted generator + log-softmax over the whole (Tm1*B, V) slab; one dense store.
    hs = hall_ref[...].reshape(Tm1 * B, DH).astype(bf)
    logits = jnp.dot(hs, gw_ref[...], preferred_element_type=jnp.float32) + gb_ref[...]
    m = jnp.max(logits, axis=1, keepdims=True)
    lse = jnp.log(jnp.sum(jnp.exp(logits - m), axis=1, keepdims=True)) + m
    out_ref[...] = (logits - lse).reshape(Tm1, B, V)


def run_decoder(sys_out, dec_emb, h0, c0, params, trg_vocab):
    S, B, DH = sys_out.shape
    Tm1, _, E = dec_emb.shape
    V = trg_vocab
    full = lambda shape: pl.BlockSpec(shape, lambda i, _s=shape: (0,) * len(_s))

    grid_spec = pltpu.PrefetchScalarGridSpec(
        num_scalar_prefetch=0,
        grid=(1,),
        in_specs=[
            full((S, B, DH)),                 # encoder outputs (bf16)
            full((Tm1, B, E)),                # decoder embeddings (30 cols, unpadded)
            full((B, DH)), full((B, DH)),     # h0, c0
            full((DH, DH)),                   # wi^T
            full((2 * DH, DH)),               # wo^T  ([st; h] rows)
            full((2 * DH, 4 * DH)),           # fused [W_ih_ct ; W_hh]^T
            full((E, 4 * DH)),                # W_ih_emb^T (hoisted projection)
            full((1, 4 * DH)),                # combined LSTMCell bias
            full((DH, V)), full((1, V)),      # generator
        ],
        out_specs=full((Tm1, B, V)),
        scratch_shapes=[
            pltpu.VMEM((Tm1, B, 4 * DH), jnp.float32),   # hoisted emb proj + bias
            pltpu.VMEM((Tm1, B, DH), jnp.float32),       # per-step hidden states
        ],
    )
    return pl.pallas_call(
        _decoder_kernel,
        out_shape=jax.ShapeDtypeStruct((Tm1, B, V), jnp.float32),
        grid_spec=grid_spec,
        compiler_params=pltpu.CompilerParams(
            dimension_semantics=("arbitrary",),
            vmem_limit_bytes=32 * 1024 * 1024),
    )(sys_out, dec_emb, h0, c0,
      params["wi_t"], params["wo_t"],
      params["dec_w_ch"], params["dec_wih_emb_t"], params["dec_b"],
      params["gen_w_t"], params["gen_b"])


# =====================================================================
# Parameter init (deterministic, synthetic) and forward glue.
# Matmul weights are stored in bf16 ONCE here; biases/embeddings stay f32.
# NOTE: importing real PyTorch weights requires summing b_ih + b_hh into the
# combined biases and transposing / concatenating weights as laid out below
# (and permuting wi/wo/W_hh input rows to the interleaved fwd/bwd h0 layout).
# =====================================================================
def init_params(key, src_vocab, trg_vocab):
    keys = jax.random.split(key, 16)
    bf = jnp.bfloat16

    def u(k, shape, scale=0.08):
        return jax.random.uniform(k, shape, jnp.float32, -scale, scale)

    p = {}
    p["enc_embed"] = u(keys[0], (src_vocab, ENC_EMBED))
    p["dec_embed"] = u(keys[1], (trg_vocab, DEC_EMBED))

    # bidirectional encoder LSTM; input projections fused along N: [fwd 4H | bwd 4H]
    wih_f = u(keys[2], (ENC_EMBED, 4 * ENC_HID))
    wih_b = u(keys[5], (ENC_EMBED, 4 * ENC_HID))
    p["enc_wih_fb"] = jnp.concatenate([wih_f, wih_b], axis=1).astype(bf)   # (30, 512)
    p["enc_whh_f"] = u(keys[3], (ENC_HID, 4 * ENC_HID)).astype(bf)
    p["enc_whh_b"] = u(keys[6], (ENC_HID, 4 * ENC_HID)).astype(bf)
    b_f = u(keys[4], (1, 4 * ENC_HID))                                     # b_ih + b_hh
    b_b = u(keys[7], (1, 4 * ENC_HID))
    p["enc_b_fb"] = jnp.concatenate([b_f, b_b], axis=1)                    # (1, 512) f32

    # attention / output projections (stored transposed); wo rows: [st (128) ; h (128)]
    p["wi_t"] = u(keys[8], (DEC_HID, DEC_HID)).astype(bf)
    p["wo_t"] = u(keys[9], (2 * DEC_HID, DEC_HID)).astype(bf)

    # decoder LSTMCell: recurrent part K-fused along [ct (128) | h (128)];
    # embedding projection kept separate (hoisted out of the decode loop).
    wih_ct_t = u(keys[10], (DEC_HID, 4 * DEC_HID))                         # W_ih^T rows 0:128
    whh_t = u(keys[12], (DEC_HID, 4 * DEC_HID))                            # W_hh^T
    p["dec_w_ch"] = jnp.concatenate([wih_ct_t, whh_t], axis=0).astype(bf)  # (256, 512)
    p["dec_wih_emb_t"] = u(keys[11], (DEC_EMBED, 4 * DEC_HID)).astype(bf)  # (30, 512)
    p["dec_b"] = u(keys[13], (1, 4 * DEC_HID))                             # b_ih + b_hh

    # generator
    p["gen_w_t"] = u(keys[14], (DEC_HID, trg_vocab)).astype(bf)
    p["gen_b"] = u(keys[15], (1, trg_vocab))
    return p


def nmt_forward(params, src_tokens, trg_tokens, trg_vocab):
    S, B = src_tokens.shape
    T = trg_tokens.shape[0]

    # Pad batch to a multiple of 8 (fills f32 sublanes); results sliced back below.
    Bp = max(8, ((B + 7) // 8) * 8)
    if Bp != B:
        src_tokens = jnp.pad(src_tokens, ((0, 0), (0, Bp - B)))
        trg_tokens = jnp.pad(trg_tokens, ((0, 0), (0, Bp - B)))

    # ---- encoder (embedding lookup is glue; fused bi-LSTM is the Pallas kernel) ----
    enc_emb = jnp.take(params["enc_embed"], src_tokens, axis=0)            # (S, Bp, 30)
    sys_out, h_fin, c_fin = run_encoder(enc_emb, params)                   # (S, Bp, 128) bf16
    # PyTorch: h.permute(1, 2, 0).view(B, 2H) -> per-hidden-unit interleave of fwd/bwd
    h0 = jnp.transpose(h_fin, (1, 2, 0)).reshape(Bp, 2 * ENC_HID)
    c0 = jnp.transpose(c_fin, (1, 2, 0)).reshape(Bp, 2 * ENC_HID)

    # ---- decoder (teacher forcing over trg[0:T-1]) ----
    dec_emb = jnp.take(params["dec_embed"], trg_tokens[:T - 1], axis=0)    # (T-1, Bp, 30)
    dec_out = run_decoder(sys_out, dec_emb, h0, c0, params, trg_vocab)     # (T-1, Bp, V)
    dec_out = dec_out[:, :B, :]

    # result[0] = -1 everywhere except result[0, :, 2] = 0  (matches the reference)
    result0 = jnp.full((1, B, trg_vocab), -1.0, jnp.float32).at[0, :, 2].set(0.0)
    return jnp.concatenate([result0, dec_out], axis=0)                     # (T, B, V)


if __name__ == "__main__":
    SRC_VOCAB, TRG_VOCAB = 16, 16
    S, T, B = 8, 6, 4

    key = jax.random.PRNGKey(0)
    kp, ks, kt = jax.random.split(key, 3)
    params = init_params(kp, SRC_VOCAB, TRG_VOCAB)
    src = jax.random.randint(ks, (S, B), 0, SRC_VOCAB, dtype=jnp.int32)
    trg = jax.random.randint(kt, (T, B), 0, TRG_VOCAB, dtype=jnp.int32)

    result = nmt_forward(params, src, trg, TRG_VOCAB)
    jax.block_until_ready(result)
    assert result.shape == (T, B, TRG_VOCAB)
    assert result.dtype == jnp.float32
    print("KERNEL_OK")
</pallas_src>

<mosaic_0001>
module attributes {stable_mosaic.version = 11 : i64} {
  func.func @_encoder_kernel(%arg0: i32, %arg1: memref<8x8x30xf32, #tpu.memory_space<vmem>>, %arg2: memref<30x512xbf16, #tpu.memory_space<vmem>>, %arg3: memref<64x256xbf16, #tpu.memory_space<vmem>>, %arg4: memref<64x256xbf16, #tpu.memory_space<vmem>>, %arg5: memref<1x512xf32, #tpu.memory_space<vmem>>, %arg6: memref<8x8x128xbf16, #tpu.memory_space<vmem>>, %arg7: memref<2x8x64xf32, #tpu.memory_space<vmem>>, %arg8: memref<2x8x64xf32, #tpu.memory_space<vmem>>, %arg9: memref<8x8x512xf32, #tpu.memory_space<vmem>>, %arg10: memref<8x8x128xf32, #tpu.memory_space<vmem>>) attributes {dimension_semantics = [#tpu.dimension_semantics<arbitrary>], iteration_bounds = array<i64: 1>, scalar_prefetch = 0 : i64, scratch_operands = 2 : i64, tpu.core_type = #tpu.core_type<tc>, window_params = [{pipeline_mode = #tpu.pipeline_mode<synchronous>, transform_indices = @transform_0, window_bounds = array<i64: 8, 8, 30>}, {pipeline_mode = #tpu.pipeline_mode<synchronous>, transform_indices = @transform_1, window_bounds = array<i64: 30, 512>}, {pipeline_mode = #tpu.pipeline_mode<synchronous>, transform_indices = @transform_2, window_bounds = array<i64: 64, 256>}, {pipeline_mode = #tpu.pipeline_mode<synchronous>, transform_indices = @transform_3, window_bounds = array<i64: 64, 256>}, {pipeline_mode = #tpu.pipeline_mode<synchronous>, transform_indices = @transform_4, window_bounds = array<i64: 1, 512>}, {pipeline_mode = #tpu.pipeline_mode<synchronous>, transform_indices = @transform_5, window_bounds = array<i64: 8, 8, 128>}, {pipeline_mode = #tpu.pipeline_mode<synchronous>, transform_indices = @transform_6, window_bounds = array<i64: 2, 8, 64>}, {pipeline_mode = #tpu.pipeline_mode<synchronous>, transform_indices = @transform_7, window_bounds = array<i64: 2, 8, 64>}]} {
    %c0 = arith.constant 0 : index
    %c0_0 = arith.constant 0 : index
    %c0_1 = arith.constant 0 : index
    %0 = vector.load %arg1[%c0, %c0_0, %c0_1] : memref<8x8x30xf32, #tpu.memory_space<vmem>>, vector<8x8x30xf32>
    %1 = vector.shape_cast %0 : vector<8x8x30xf32> to vector<64x30xf32>
    %2 = arith.truncf %1 : vector<64x30xf32> to vector<64x30xbf16>
    %c0_2 = arith.constant 0 : index
    %c0_3 = arith.constant 0 : index
    %3 = vector.load %arg2[%c0_2, %c0_3] : memref<30x512xbf16, #tpu.memory_space<vmem>>, vector<30x512xbf16>
    %cst = arith.constant dense<0.000000e+00> : vector<64x512xf32>
    %4 = tpu.matmul %2, %3, %cst {dimension_numbers = #tpu.dot_dimension_numbers<[1], [0], [0], [1], [0, 0, 1, 1], [], []>} : vector<64x30xbf16>, vector<30x512xbf16>, vector<64x512xf32> -> vector<64x512xf32>
    %c0_4 = arith.constant 0 : index
    %c0_5 = arith.constant 0 : index
    %5 = vector.load %arg5[%c0_4, %c0_5] : memref<1x512xf32, #tpu.memory_space<vmem>>, vector<1x512xf32>
    %6 = vector.broadcast %5 : vector<1x512xf32> to vector<64x512xf32>
    %7 = arith.addf %4, %6 : vector<64x512xf32>
    %8 = vector.shape_cast %7 : vector<64x512xf32> to vector<8x8x512xf32>
    %c0_6 = arith.constant 0 : index
    %c0_7 = arith.constant 0 : index
    %c0_8 = arith.constant 0 : index
    %9 = vector.load %arg9[%c0_6, %c0_7, %c0_8] : memref<8x8x512xf32, #tpu.memory_space<vmem>>, vector<8x8x512xf32>
    tpu.vector_store %arg9[%c0_6, %c0_7, %c0_8], %8 {strides = array<i32>} : memref<8x8x512xf32, #tpu.memory_space<vmem>>, vector<8x8x512xf32>,
    %c0_9 = arith.constant 0 : index
    %c0_10 = arith.constant 0 : index
    %10 = vector.load %arg3[%c0_9, %c0_10] : memref<64x256xbf16, #tpu.memory_space<vmem>>, vector<64x256xbf16>
    %c0_11 = arith.constant 0 : index
    %c0_12 = arith.constant 0 : index
    %11 = vector.load %arg4[%c0_11, %c0_12] : memref<64x256xbf16, #tpu.memory_space<vmem>>, vector<64x256xbf16>
    %cst_13 = arith.constant 0.000000e+00 : f32
    %12 = vector.broadcast %cst_13 : f32 to vector<8x64xf32>
    %c0_i32 = arith.constant 0 : i32
    %c7_i32 = arith.constant 7 : i32
    %13 = arith.subi %c7_i32, %c0_i32 : i32
    %14 = arith.index_cast %c0_i32 : i32 to index
    %c0_14 = arith.constant 0 : index
    %c0_15 = arith.constant 0 : index
    %15 = vector.load %arg9[%14, %c0_14, %c0_15] : memref<8x8x512xf32, #tpu.memory_space<vmem>>, vector<1x8x256xf32>
    %16 = vector.shape_cast %15 : vector<1x8x256xf32> to vector<8x256xf32>
    %17 = arith.truncf %12 : vector<8x64xf32> to vector<8x64xbf16>
    %cst_16 = arith.constant dense<0.000000e+00> : vector<8x256xf32>
    %18 = tpu.matmul %17, %10, %cst_16 {dimension_numbers = #tpu.dot_dimension_numbers<[1], [0], [0], [1], [0, 0, 1, 1], [], []>} : vector<8x64xbf16>, vector<64x256xbf16>, vector<8x256xf32> -> vector<8x256xf32>
    %19 = arith.addf %16, %18 : vector<8x256xf32>
    %20 = vector.extract_strided_slice %19 {offsets = [0, 0], sizes = [8, 64], strides = [1, 1]} : vector<8x256xf32> to vector<8x64xf32>
    %21 = arith.negf %20 : vector<8x64xf32>
    %22 = math.exp %21 : vector<8x64xf32>
    %cst_17 = arith.constant 1.000000e+00 : f32
    %23 = vector.broadcast %cst_17 : f32 to vector<8x64xf32>
    %24 = arith.addf %23, %22 : vector<8x64xf32>
    %25 = arith.divf %23, %24 : vector<8x64xf32>
    %26 = vector.extract_strided_slice %19 {offsets = [0, 64], sizes = [8, 64], strides = [1, 1]} : vector<8x256xf32> to vector<8x64xf32>
    %27 = arith.negf %26 : vector<8x64xf32>
    %28 = math.exp %27 : vector<8x64xf32>
    %cst_18 = arith.constant 1.000000e+00 : f32
    %29 = vector.broadcast %cst_18 : f32 to vector<8x64xf32>
    %30 = arith.addf %29, %28 : vector<8x64xf32>
    %31 = arith.divf %29, %30 : vector<8x64xf32>
    %32 = vector.extract_strided_slice %19 {offsets = [0, 128], sizes = [8, 64], strides = [1, 1]} : vector<8x256xf32> to vector<8x64xf32>
    %33 = math.tanh %32 : vector<8x64xf32>
    %34 = vector.extract_strided_slice %19 {offsets = [0, 192], sizes = [8, 64], strides = [1, 1]} : vector<8x256xf32> to vector<8x64xf32>
    %35 = arith.negf %34 : vector<8x64xf32>
    %36 = math.exp %35 : vector<8x64xf32>
    %cst_19 = arith.constant 1.000000e+00 : f32
    %37 = vector.broadcast %cst_19 : f32 to vector<8x64xf32>
    %38 = arith.addf %37, %36 : vector<8x64xf32>
    %39 = arith.divf %37, %38 : vector<8x64xf32>
    %40 = arith.mulf %31, %12 : vector<8x64xf32>
    %41 = arith.mulf %25, %33 : vector<8x64xf32>
    %42 = arith.addf %40, %41 : vector<8x64xf32>
    %43 = math.tanh %42 : vector<8x64xf32>
    %44 = arith.mulf %39, %43 : vector<8x64xf32>
    %45 = arith.index_cast %13 : i32 to index
    %c0_20 = arith.constant 0 : index
    %c256 = arith.constant 256 : index
    %46 = vector.load %arg9[%45, %c0_20, %c256] : memref<8x8x512xf32, #tpu.memory_space<vmem>>, vector<1x8x256xf32>
    %47 = vector.shape_cast %46 : vector<1x8x256xf32> to vector<8x256xf32>
    %48 = arith.truncf %12 : vector<8x64xf32> to vector<8x64xbf16>
    %cst_21 = arith.constant dense<0.000000e+00> : vector<8x256xf32>
    %49 = tpu.matmul %48, %11, %cst_21 {dimension_numbers = #tpu.dot_dimension_numbers<[1], [0], [0], [1], [0, 0, 1, 1], [], []>} : vector<8x64xbf16>, vector<64x256xbf16>, vector<8x256xf32> -> vector<8x256xf32>
    %50 = arith.addf %47, %49 : vector<8x256xf32>
    %51 = vector.extract_strided_slice %50 {offsets = [0, 0], sizes = [8, 64], strides = [1, 1]} : vector<8x256xf32> to vector<8x64xf32>
    %52 = arith.negf %51 : vector<8x64xf32>
    %53 = math.exp %52 : vector<8x64xf32>
    %cst_22 = arith.constant 1.000000e+00 : f32
    %54 = vector.broadcast %cst_22 : f32 to vector<8x64xf32>
    %55 = arith.addf %54, %53 : vector<8x64xf32>
    %56 = arith.divf %54, %55 : vector<8x64xf32>
    %57 = vector.extract_strided_slice %50 {offsets = [0, 64], sizes = [8, 64], strides = [1, 1]} : vector<8x256xf32> to vector<8x64xf32>
    %58 = arith.negf %57 : vector<8x64xf32>
    %59 = math.exp %58 : vector<8x64xf32>
    %cst_23 = arith.constant 1.000000e+00 : f32
    %60 = vector.broadcast %cst_23 : f32 to vector<8x64xf32>
    %61 = arith.addf %60, %59 : vector<8x64xf32>
    %62 = arith.divf %60, %61 : vector<8x64xf32>
    %63 = vector.extract_strided_slice %50 {offsets = [0, 128], sizes = [8, 64], strides = [1, 1]} : vector<8x256xf32> to vector<8x64xf32>
    %64 = math.tanh %63 : vector<8x64xf32>
    %65 = vector.extract_strided_slice %50 {offsets = [0, 192], sizes = [8, 64], strides = [1, 1]} : vector<8x256xf32> to vector<8x64xf32>
    %66 = arith.negf %65 : vector<8x64xf32>
    %67 = math.exp %66 : vector<8x64xf32>
    %cst_24 = arith.constant 1.000000e+00 : f32
    %68 = vector.broadcast %cst_24 : f32 to vector<8x64xf32>
    %69 = arith.addf %68, %67 : vector<8x64xf32>
    %70 = arith.divf %68, %69 : vector<8x64xf32>
    %71 = arith.mulf %62, %12 : vector<8x64xf32>
    %72 = arith.mulf %56, %64 : vector<8x64xf32>
    %73 = arith.addf %71, %72 : vector<8x64xf32>
    %74 = math.tanh %73 : vector<8x64xf32>
    %75 = arith.mulf %70, %74 : vector<8x64xf32>
    %76 = arith.index_cast %c0_i32 : i32 to index
    %c0_25 = arith.constant 0 : index
    %c0_26 = arith.constant 0 : index
    %77 = vector.load %arg10[%76, %c0_25, %c0_26] : memref<8x8x128xf32, #tpu.memory_space<vmem>>, vector<1x8x64xf32>
    %78 = vector.shape_cast %77 : vector<1x8x64xf32> to vector<8x64xf32>
    %79 = vector.shape_cast %44 : vector<8x64xf32> to vector<1x8x64xf32>
    tpu.vector_store %arg10[%76, %c0_25, %c0_26], %79 {strides = array<i32>} : memref<8x8x128xf32, #tpu.memory_space<vmem>>, vector<1x8x64xf32>,
    %80 = arith.index_cast %13 : i32 to index
    %c0_27 = arith.constant 0 : index
    %c64 = arith.constant 64 : index
    %81 = vector.load %arg10[%80, %c0_27, %c64] : memref<8x8x128xf32, #tpu.memory_space<vmem>>, vector<1x8x64xf32>
    %82 = vector.shape_cast %81 : vector<1x8x64xf32> to vector<8x64xf32>
    %83 = vector.shape_cast %75 : vector<8x64xf32> to vector<1x8x64xf32>
    tpu.vector_store %arg10[%80, %c0_27, %c64], %83 {strides = array<i32>} : memref<8x8x128xf32, #tpu.memory_space<vmem>>, vector<1x8x64xf32>,
    %c1_i32 = arith.constant 1 : i32
    %c7_i32_28 = arith.constant 7 : i32
    %84 = arith.subi %c7_i32_28, %c1_i32 : i32
    %85 = arith.index_cast %c1_i32 : i32 to index
    %c0_29 = arith.constant 0 : index
    %c0_30 = arith.constant 0 : index
    %86 = vector.load %arg9[%85, %c0_29, %c0_30] : memref<8x8x512xf32, #tpu.memory_space<vmem>>, vector<1x8x256xf32>
    %87 = vector.shape_cast %86 : vector<1x8x256xf32> to vector<8x256xf32>
    %88 = arith.truncf %44 : vector<8x64xf32> to vector<8x64xbf16>
    %cst_31 = arith.constant dense<0.000000e+00> : vector<8x256xf32>
    %89 = tpu.matmul %88, %10, %cst_31 {dimension_numbers = #tpu.dot_dimension_numbers<[1], [0], [0], [1], [0, 0, 1, 1], [], []>} : vector<8x64xbf16>, vector<64x256xbf16>, vector<8x256xf32> -> vector<8x256xf32>
    %90 = arith.addf %87, %89 : vector<8x256xf32>
    %91 = vector.extract_strided_slice %90 {offsets = [0, 0], sizes = [8, 64], strides = [1, 1]} : vector<8x256xf32> to vector<8x64xf32>
    %92 = arith.negf %91 : vector<8x64xf32>
    %93 = math.exp %92 : vector<8x64xf32>
    %cst_32 = arith.constant 1.000000e+00 : f32
    %94 = vector.broadcast %cst_32 : f32 to vector<8x64xf32>
    %95 = arith.addf %94, %93 : vector<8x64xf32>
    %96 = arith.divf %94, %95 : vector<8x64xf32>
    %97 = vector.extract_strided_slice %90 {offsets = [0, 64], sizes = [8, 64], strides = [1, 1]} : vector<8x256xf32> to vector<8x64xf32>
    %98 = arith.negf %97 : vector<8x64xf32>
    %99 = math.exp %98 : vector<8x64xf32>
    %cst_33 = arith.constant 1.000000e+00 : f32
    %100 = vector.broadcast %cst_33 : f32 to vector<8x64xf32>
    %101 = arith.addf %100, %99 : vector<8x64xf32>
    %102 = arith.divf %100, %101 : vector<8x64xf32>
    %103 = vector.extract_strided_slice %90 {offsets = [0, 128], sizes = [8, 64], strides = [1, 1]} : vector<8x256xf32> to vector<8x64xf32>
    %104 = math.tanh %103 : vector<8x64xf32>
    %105 = vector.extract_strided_slice %90 {offsets = [0, 192], sizes = [8, 64], strides = [1, 1]} : vector<8x256xf32> to vector<8x64xf32>
    %106 = arith.negf %105 : vector<8x64xf32>
    %107 = math.exp %106 : vector<8x64xf32>
    %cst_34 = arith.constant 1.000000e+00 : f32
    %108 = vector.broadcast %cst_34 : f32 to vector<8x64xf32>
    %109 = arith.addf %108, %107 : vector<8x64xf32>
    %110 = arith.divf %108, %109 : vector<8x64xf32>
    %111 = arith.mulf %102, %42 : vector<8x64xf32>
    %112 = arith.mulf %96, %104 : vector<8x64xf32>
    %113 = arith.addf %111, %112 : vector<8x64xf32>
    %114 = math.tanh %113 : vector<8x64xf32>
    %115 = arith.mulf %110, %114 : vector<8x64xf32>
    %116 = arith.index_cast %84 : i32 to index
    %c0_35 = arith.constant 0 : index
    %c256_36 = arith.constant 256 : index
    %117 = vector.load %arg9[%116, %c0_35, %c256_36] : memref<8x8x512xf32, #tpu.memory_space<vmem>>, vector<1x8x256xf32>
    %118 = vector.shape_cast %117 : vector<1x8x256xf32> to vector<8x256xf32>
    %119 = arith.truncf %75 : vector<8x64xf32> to vector<8x64xbf16>
    %cst_37 = arith.constant dense<0.000000e+00> : vector<8x256xf32>
    %120 = tpu.matmul %119, %11, %cst_37 {dimension_numbers = #tpu.dot_dimension_numbers<[1], [0], [0], [1], [0, 0, 1, 1], [], []>} : vector<8x64xbf16>, vector<64x256xbf16>, vector<8x256xf32> -> vector<8x256xf32>
    %121 = arith.addf %118, %120 : vector<8x256xf32>
    %122 = vector.extract_strided_slice %121 {offsets = [0, 0], sizes = [8, 64], strides = [1, 1]} : vector<8x256xf32> to vector<8x64xf32>
    %123 = arith.negf %122 : vector<8x64xf32>
    %124 = math.exp %123 : vector<8x64xf32>
    %cst_38 = arith.constant 1.000000e+00 : f32
    %125 = vector.broadcast %cst_38 : f32 to vector<8x64xf32>
    %126 = arith.addf %125, %124 : vector<8x64xf32>
    %127 = arith.divf %125, %126 : vector<8x64xf32>
    %128 = vector.extract_strided_slice %121 {offsets = [0, 64], sizes = [8, 64], strides = [1, 1]} : vector<8x256xf32> to vector<8x64xf32>
    %129 = arith.negf %128 : vector<8x64xf32>
    %130 = math.exp %129 : vector<8x64xf32>
    %cst_39 = arith.constant 1.000000e+00 : f32
    %131 = vector.broadcast %cst_39 : f32 to vector<8x64xf32>
    %132 = arith.addf %131, %130 : vector<8x64xf32>
    %133 = arith.divf %131, %132 : vector<8x64xf32>
    %134 = vector.extract_strided_slice %121 {offsets = [0, 128], sizes = [8, 64], strides = [1, 1]} : vector<8x256xf32> to vector<8x64xf32>
    %135 = math.tanh %134 : vector<8x64xf32>
    %136 = vector.extract_strided_slice %121 {offsets = [0, 192], sizes = [8, 64], strides = [1, 1]} : vector<8x256xf32> to vector<8x64xf32>
    %137 = arith.negf %136 : vector<8x64xf32>
    %138 = math.exp %137 : vector<8x64xf32>
    %cst_40 = arith.constant 1.000000e+00 : f32
    %139 = vector.broadcast %cst_40 : f32 to vector<8x64xf32>
    %140 = arith.addf %139, %138 : vector<8x64xf32>
    %141 = arith.divf %139, %140 : vector<8x64xf32>
    %142 = arith.mulf %133, %73 : vector<8x64xf32>
    %143 = arith.mulf %127, %135 : vector<8x64xf32>
    %144 = arith.addf %142, %143 : vector<8x64xf32>
    %145 = math.tanh %144 : vector<8x64xf32>
    %146 = arith.mulf %141, %145 : vector<8x64xf32>
    %147 = arith.index_cast %c1_i32 : i32 to index
    %c0_41 = arith.constant 0 : index
    %c0_42 = arith.constant 0 : index
    %148 = vector.load %arg10[%147, %c0_41, %c0_42] : memref<8x8x128xf32, #tpu.memory_space<vmem>>, vector<1x8x64xf32>
    %149 = vector.shape_cast %148 : vector<1x8x64xf32> to vector<8x64xf32>
    %150 = vector.shape_cast %115 : vector<8x64xf32> to vector<1x8x64xf32>
    tpu.vector_store %arg10[%147, %c0_41, %c0_42], %150 {strides = array<i32>} : memref<8x8x128xf32, #tpu.memory_space<vmem>>, vector<1x8x64xf32>,
    %151 = arith.index_cast %84 : i32 to index
    %c0_43 = arith.constant 0 : index
    %c64_44 = arith.constant 64 : index
    %152 = vector.load %arg10[%151, %c0_43, %c64_44] : memref<8x8x128xf32, #tpu.memory_space<vmem>>, vector<1x8x64xf32>
    %153 = vector.shape_cast %152 : vector<1x8x64xf32> to vector<8x64xf32>
    %154 = vector.shape_cast %146 : vector<8x64xf32> to vector<1x8x64xf32>
    tpu.vector_store %arg10[%151, %c0_43, %c64_44], %154 {strides = array<i32>} : memref<8x8x128xf32, #tpu.memory_space<vmem>>, vector<1x8x64xf32>,
    %c2_i32 = arith.constant 2 : i32
    %c7_i32_45 = arith.constant 7 : i32
    %155 = arith.subi %c7_i32_45, %c2_i32 : i32
    %156 = arith.index_cast %c2_i32 : i32 to index
    %c0_46 = arith.constant 0 : index
    %c0_47 = arith.constant 0 : index
    %157 = vector.load %arg9[%156, %c0_46, %c0_47] : memref<8x8x512xf32, #tpu.memory_space<vmem>>, vector<1x8x256xf32>
    %158 = vector.shape_cast %157 : vector<1x8x256xf32> to vector<8x256xf32>
    %159 = arith.truncf %115 : vector<8x64xf32> to vector<8x64xbf16>
    %cst_48 = arith.constant dense<0.000000e+00> : vector<8x256xf32>
    %160 = tpu.matmul %159, %10, %cst_48 {dimension_numbers = #tpu.dot_dimension_numbers<[1], [0], [0], [1], [0, 0, 1, 1], [], []>} : vector<8x64xbf16>, vector<64x256xbf16>, vector<8x256xf32> -> vector<8x256xf32>
    %161 = arith.addf %158, %160 : vector<8x256xf32>
    %162 = vector.extract_strided_slice %161 {offsets = [0, 0], sizes = [8, 64], strides = [1, 1]} : vector<8x256xf32> to vector<8x64xf32>
    %163 = arith.negf %162 : vector<8x64xf32>
    %164 = math.exp %163 : vector<8x64xf32>
    %cst_49 = arith.constant 1.000000e+00 : f32
    %165 = vector.broadcast %cst_49 : f32 to vector<8x64xf32>
    %166 = arith.addf %165, %164 : vector<8x64xf32>
    %167 = arith.divf %165, %166 : vector<8x64xf32>
    %168 = vector.extract_strided_slice %161 {offsets = [0, 64], sizes = [8, 64], strides = [1, 1]} : vector<8x256xf32> to vector<8x64xf32>
    %169 = arith.negf %168 : vector<8x64xf32>
    %170 = math.exp %169 : vector<8x64xf32>
    %cst_50 = arith.constant 1.000000e+00 : f32
    %171 = vector.broadcast %cst_50 : f32 to vector<8x64xf32>
    %172 = arith.addf %171, %170 : vector<8x64xf32>
    %173 = arith.divf %171, %172 : vector<8x64xf32>
    %174 = vector.extract_strided_slice %161 {offsets = [0, 128], sizes = [8, 64], strides = [1, 1]} : vector<8x256xf32> to vector<8x64xf32>
    %175 = math.tanh %174 : vector<8x64xf32>
    %176 = vector.extract_strided_slice %161 {offsets = [0, 192], sizes = [8, 64], strides = [1, 1]} : vector<8x256xf32> to vector<8x64xf32>
    %177 = arith.negf %176 : vector<8x64xf32>
    %178 = math.exp %177 : vector<8x64xf32>
    %cst_51 = arith.constant 1.000000e+00 : f32
    %179 = vector.broadcast %cst_51 : f32 to vector<8x64xf32>
    %180 = arith.addf %179, %178 : vector<8x64xf32>
    %181 = arith.divf %179, %180 : vector<8x64xf32>
    %182 = arith.mulf %173, %113 : vector<8x64xf32>
    %183 = arith.mulf %167, %175 : vector<8x64xf32>
    %184 = arith.addf %182, %183 : vector<8x64xf32>
    %185 = math.tanh %184 : vector<8x64xf32>
    %186 = arith.mulf %181, %185 : vector<8x64xf32>
    %187 = arith.index_cast %155 : i32 to index
    %c0_52 = arith.constant 0 : index
    %c256_53 = arith.constant 256 : index
    %188 = vector.load %arg9[%187, %c0_52, %c256_53] : memref<8x8x512xf32, #tpu.memory_space<vmem>>, vector<1x8x256xf32>
    %189 = vector.shape_cast %188 : vector<1x8x256xf32> to vector<8x256xf32>
    %190 = arith.truncf %146 : vector<8x64xf32> to vector<8x64xbf16>
    %cst_54 = arith.constant dense<0.000000e+00> : vector<8x256xf32>
    %191 = tpu.matmul %190, %11, %cst_54 {dimension_numbers = #tpu.dot_dimension_numbers<[1], [0], [0], [1], [0, 0, 1, 1], [], []>} : vector<8x64xbf16>, vector<64x256xbf16>, vector<8x256xf32> -> vector<8x256xf32>
    %192 = arith.addf %189, %191 : vector<8x256xf32>
    %193 = vector.extract_strided_slice %192 {offsets = [0, 0], sizes = [8, 64], strides = [1, 1]} : vector<8x256xf32> to vector<8x64xf32>
    %194 = arith.negf %193 : vector<8x64xf32>
    %195 = math.exp %194 : vector<8x64xf32>
    %cst_55 = arith.constant 1.000000e+00 : f32
    %196 = vector.broadcast %cst_55 : f32 to vector<8x64xf32>
    %197 = arith.addf %196, %195 : vector<8x64xf32>
    %198 = arith.divf %196, %197 : vector<8x64xf32>
    %199 = vector.extract_strided_slice %192 {offsets = [0, 64], sizes = [8, 64], strides = [1, 1]} : vector<8x256xf32> to vector<8x64xf32>
    %200 = arith.negf %199 : vector<8x64xf32>
    %201 = math.exp %200 : vector<8x64xf32>
    %cst_56 = arith.constant 1.000000e+00 : f32
    %202 = vector.broadcast %cst_56 : f32 to vector<8x64xf32>
    %203 = arith.addf %202, %201 : vector<8x64xf32>
    %204 = arith.divf %202, %203 : vector<8x64xf32>
    %205 = vector.extract_strided_slice %192 {offsets = [0, 128], sizes = [8, 64], strides = [1, 1]} : vector<8x256xf32> to vector<8x64xf32>
    %206 = math.tanh %205 : vector<8x64xf32>
    %207 = vector.extract_strided_slice %192 {offsets = [0, 192], sizes = [8, 64], strides = [1, 1]} : vector<8x256xf32> to vector<8x64xf32>
    %208 = arith.negf %207 : vector<8x64xf32>
    %209 = math.exp %208 : vector<8x64xf32>
    %cst_57 = arith.constant 1.000000e+00 : f32
    %210 = vector.broadcast %cst_57 : f32 to vector<8x64xf32>
    %211 = arith.addf %210, %209 : vector<8x64xf32>
    %212 = arith.divf %210, %211 : vector<8x64xf32>
    %213 = arith.mulf %204, %144 : vector<8x64xf32>
    %214 = arith.mulf %198, %206 : vector<8x64xf32>
    %215 = arith.addf %213, %214 : vector<8x64xf32>
    %216 = math.tanh %215 : vector<8x64xf32>
    %217 = arith.mulf %212, %216 : vector<8x64xf32>
    %218 = arith.index_cast %c2_i32 : i32 to index
    %c0_58 = arith.constant 0 : index
    %c0_59 = arith.constant 0 : index
    %219 = vector.load %arg10[%218, %c0_58, %c0_59] : memref<8x8x128xf32, #tpu.memory_space<vmem>>, vector<1x8x64xf32>
    %220 = vector.shape_cast %219 : vector<1x8x64xf32> to vector<8x64xf32>
    %221 = vector.shape_cast %186 : vector<8x64xf32> to vector<1x8x64xf32>
    tpu.vector_store %arg10[%218, %c0_58, %c0_59], %221 {strides = array<i32>} : memref<8x8x128xf32, #tpu.memory_space<vmem>>, vector<1x8x64xf32>,
    %222 = arith.index_cast %155 : i32 to index
    %c0_60 = arith.constant 0 : index
    %c64_61 = arith.constant 64 : index
    %223 = vector.load %arg10[%222, %c0_60, %c64_61] : memref<8x8x128xf32, #tpu.memory_space<vmem>>, vector<1x8x64xf32>
    %224 = vector.shape_cast %223 : vector<1x8x64xf32> to vector<8x64xf32>
    %225 = vector.shape_cast %217 : vector<8x64xf32> to vector<1x8x64xf32>
    tpu.vector_store %arg10[%222, %c0_60, %c64_61], %225 {strides = array<i32>} : memref<8x8x128xf32, #tpu.memory_space<vmem>>, vector<1x8x64xf32>,
    %c3_i32 = arith.constant 3 : i32
    %c7_i32_62 = arith.constant 7 : i32
    %226 = arith.subi %c7_i32_62, %c3_i32 : i32
    %227 = arith.index_cast %c3_i32 : i32 to index
    %c0_63 = arith.constant 0 : index
    %c0_64 = arith.constant 0 : index
    %228 = vector.load %arg9[%227, %c0_63, %c0_64] : memref<8x8x512xf32, #tpu.memory_space<vmem>>, vector<1x8x256xf32>
    %229 = vector.shape_cast %228 : vector<1x8x256xf32> to vector<8x256xf32>
    %230 = arith.truncf %186 : vector<8x64xf32> to vector<8x64xbf16>
    %cst_65 = arith.constant dense<0.000000e+00> : vector<8x256xf32>
    %231 = tpu.matmul %230, %10, %cst_65 {dimension_numbers = #tpu.dot_dimension_numbers<[1], [0], [0], [1], [0, 0, 1, 1], [], []>} : vector<8x64xbf16>, vector<64x256xbf16>, vector<8x256xf32> -> vector<8x256xf32>
    %232 = arith.addf %229, %231 : vector<8x256xf32>
    %233 = vector.extract_strided_slice %232 {offsets = [0, 0], sizes = [8, 64], strides = [1, 1]} : vector<8x256xf32> to vector<8x64xf32>
    %234 = arith.negf %233 : vector<8x64xf32>
    %235 = math.exp %234 : vector<8x64xf32>
    %cst_66 = arith.constant 1.000000e+00 : f32
    %236 = vector.broadcast %cst_66 : f32 to vector<8x64xf32>
    %237 = arith.addf %236, %235 : vector<8x64xf32>
    %238 = arith.divf %236, %237 : vector<8x64xf32>
    %239 = vector.extract_strided_slice %232 {offsets = [0, 64], sizes = [8, 64], strides = [1, 1]} : vector<8x256xf32> to vector<8x64xf32>
    %240 = arith.negf %239 : vector<8x64xf32>
    %241 = math.exp %240 : vector<8x64xf32>
    %cst_67 = arith.constant 1.000000e+00 : f32
    %242 = vector.broadcast %cst_67 : f32 to vector<8x64xf32>
    %243 = arith.addf %242, %241 : vector<8x64xf32>
    %244 = arith.divf %242, %243 : vector<8x64xf32>
    %245 = vector.extract_strided_slice %232 {offsets = [0, 128], sizes = [8, 64], strides = [1, 1]} : vector<8x256xf32> to vector<8x64xf32>
    %246 = math.tanh %245 : vector<8x64xf32>
    %247 = vector.extract_strided_slice %232 {offsets = [0, 192], sizes = [8, 64], strides = [1, 1]} : vector<8x256xf32> to vector<8x64xf32>
    %248 = arith.negf %247 : vector<8x64xf32>
    %249 = math.exp %248 : vector<8x64xf32>
    %cst_68 = arith.constant 1.000000e+00 : f32
    %250 = vector.broadcast %cst_68 : f32 to vector<8x64xf32>
    %251 = arith.addf %250, %249 : vector<8x64xf32>
    %252 = arith.divf %250, %251 : vector<8x64xf32>
    %253 = arith.mulf %244, %184 : vector<8x64xf32>
    %254 = arith.mulf %238, %246 : vector<8x64xf32>
    %255 = arith.addf %253, %254 : vector<8x64xf32>
    %256 = math.tanh %255 : vector<8x64xf32>
    %257 = arith.mulf %252, %256 : vector<8x64xf32>
    %258 = arith.index_cast %226 : i32 to index
    %c0_69 = arith.constant 0 : index
    %c256_70 = arith.constant 256 : index
    %259 = vector.load %arg9[%258, %c0_69, %c256_70] : memref<8x8x512xf32, #tpu.memory_space<vmem>>, vector<1x8x256xf32>
    %260 = vector.shape_cast %259 : vector<1x8x256xf32> to vector<8x256xf32>
    %261 = arith.truncf %217 : vector<8x64xf32> to vector<8x64xbf16>
    %cst_71 = arith.constant dense<0.000000e+00> : vector<8x256xf32>
    %262 = tpu.matmul %261, %11, %cst_71 {dimension_numbers = #tpu.dot_dimension_numbers<[1], [0], [0], [1], [0, 0, 1, 1], [], []>} : vector<8x64xbf16>, vector<64x256xbf16>, vector<8x256xf32> -> vector<8x256xf32>
    %263 = arith.addf %260, %262 : vector<8x256xf32>
    %264 = vector.extract_strided_slice %263 {offsets = [0, 0], sizes = [8, 64], strides = [1, 1]} : vector<8x256xf32> to vector<8x64xf32>
    %265 = arith.negf %264 : vector<8x64xf32>
    %266 = math.exp %265 : vector<8x64xf32>
    %cst_72 = arith.constant 1.000000e+00 : f32
    %267 = vector.broadcast %cst_72 : f32 to vector<8x64xf32>
    %268 = arith.addf %267, %266 : vector<8x64xf32>
    %269 = arith.divf %267, %268 : vector<8x64xf32>
    %270 = vector.extract_strided_slice %263 {offsets = [0, 64], sizes = [8, 64], strides = [1, 1]} : vector<8x256xf32> to vector<8x64xf32>
    %271 = arith.negf %270 : vector<8x64xf32>
    %272 = math.exp %271 : vector<8x64xf32>
    %cst_73 = arith.constant 1.000000e+00 : f32
    %273 = vector.broadcast %cst_73 : f32 to vector<8x64xf32>
    %274 = arith.addf %273, %272 : vector<8x64xf32>
    %275 = arith.divf %273, %274 : vector<8x64xf32>
    %276 = vector.extract_strided_slice %263 {offsets = [0, 128], sizes = [8, 64], strides = [1, 1]} : vector<8x256xf32> to vector<8x64xf32>
    %277 = math.tanh %276 : vector<8x64xf32>
    %278 = vector.extract_strided_slice %263 {offsets = [0, 192], sizes = [8, 64], strides = [1, 1]} : vector<8x256xf32> to vector<8x64xf32>
    %279 = arith.negf %278 : vector<8x64xf32>
    %280 = math.exp %279 : vector<8x64xf32>
    %cst_74 = arith.constant 1.000000e+00 : f32
    %281 = vector.broadcast %cst_74 : f32 to vector<8x64xf32>
    %282 = arith.addf %281, %280 : vector<8x64xf32>
    %283 = arith.divf %281, %282 : vector<8x64xf32>
    %284 = arith.mulf %275, %215 : vector<8x64xf32>
    %285 = arith.mulf %269, %277 : vector<8x64xf32>
    %286 = arith.addf %284, %285 : vector<8x64xf32>
    %287 = math.tanh %286 : vector<8x64xf32>
    %288 = arith.mulf %283, %287 : vector<8x64xf32>
    %289 = arith.index_cast %c3_i32 : i32 to index
    %c0_75 = arith.constant 0 : index
    %c0_76 = arith.constant 0 : index
    %290 = vector.load %arg10[%289, %c0_75, %c0_76] : memref<8x8x128xf32, #tpu.memory_space<vmem>>, vector<1x8x64xf32>
    %291 = vector.shape_cast %290 : vector<1x8x64xf32> to vector<8x64xf32>
    %292 = vector.shape_cast %257 : vector<8x64xf32> to vector<1x8x64xf32>
    tpu.vector_store %arg10[%289, %c0_75, %c0_76], %292 {strides = array<i32>} : memref<8x8x128xf32, #tpu.memory_space<vmem>>, vector<1x8x64xf32>,
    %293 = arith.index_cast %226 : i32 to index
    %c0_77 = arith.constant 0 : index
    %c64_78 = arith.constant 64 : index
    %294 = vector.load %arg10[%293, %c0_77, %c64_78] : memref<8x8x128xf32, #tpu.memory_space<vmem>>, vector<1x8x64xf32>
    %295 = vector.shape_cast %294 : vector<1x8x64xf32> to vector<8x64xf32>
    %296 = vector.shape_cast %288 : vector<8x64xf32> to vector<1x8x64xf32>
    tpu.vector_store %arg10[%293, %c0_77, %c64_78], %296 {strides = array<i32>} : memref<8x8x128xf32, #tpu.memory_space<vmem>>, vector<1x8x64xf32>,
    %c4_i32 = arith.constant 4 : i32
    %c7_i32_79 = arith.constant 7 : i32
    %297 = arith.subi %c7_i32_79, %c4_i32 : i32
    %298 = arith.index_cast %c4_i32 : i32 to index
    %c0_80 = arith.constant 0 : index
    %c0_81 = arith.constant 0 : index
    %299 = vector.load %arg9[%298, %c0_80, %c0_81] : memref<8x8x512xf32, #tpu.memory_space<vmem>>, vector<1x8x256xf32>
    %300 = vector.shape_cast %299 : vector<1x8x256xf32> to vector<8x256xf32>
    %301 = arith.truncf %257 : vector<8x64xf32> to vector<8x64xbf16>
    %cst_82 = arith.constant dense<0.000000e+00> : vector<8x256xf32>
    %302 = tpu.matmul %301, %10, %cst_82 {dimension_numbers = #tpu.dot_dimension_numbers<[1], [0], [0], [1], [0, 0, 1, 1], [], []>} : vector<8x64xbf16>, vector<64x256xbf16>, vector<8x256xf32> -> vector<8x256xf32>
    %303 = arith.addf %300, %302 : vector<8x256xf32>
    %304 = vector.extract_strided_slice %303 {offsets = [0, 0], sizes = [8, 64], strides = [1, 1]} : vector<8x256xf32> to vector<8x64xf32>
    %305 = arith.negf %304 : vector<8x64xf32>
    %306 = math.exp %305 : vector<8x64xf32>
    %cst_83 = arith.constant 1.000000e+00 : f32
    %307 = vector.broadcast %cst_83 : f32 to vector<8x64xf32>
    %308 = arith.addf %307, %306 : vector<8x64xf32>
    %309 = arith.divf %307, %308 : vector<8x64xf32>
    %310 = vector.extract_strided_slice %303 {offsets = [0, 64], sizes = [8, 64], strides = [1, 1]} : vector<8x256xf32> to vector<8x64xf32>
    %311 = arith.negf %310 : vector<8x64xf32>
    %312 = math.exp %311 : vector<8x64xf32>
    %cst_84 = arith.constant 1.000000e+00 : f32
    %313 = vector.broadcast %cst_84 : f32 to vector<8x64xf32>
    %314 = arith.addf %313, %312 : vector<8x64xf32>
    %315 = arith.divf %313, %314 : vector<8x64xf32>
    %316 = vector.extract_strided_slice %303 {offsets = [0, 128], sizes = [8, 64], strides = [1, 1]} : vector<8x256xf32> to vector<8x64xf32>
    %317 = math.tanh %316 : vector<8x64xf32>
    %318 = vector.extract_strided_slice %303 {offsets = [0, 192], sizes = [8, 64], strides = [1, 1]} : vector<8x256xf32> to vector<8x64xf32>
    %319 = arith.negf %318 : vector<8x64xf32>
    %320 = math.exp %319 : vector<8x64xf32>
    %cst_85 = arith.constant 1.000000e+00 : f32
    %321 = vector.broadcast %cst_85 : f32 to vector<8x64xf32>
    %322 = arith.addf %321, %320 : vector<8x64xf32>
    %323 = arith.divf %321, %322 : vector<8x64xf32>
    %324 = arith.mulf %315, %255 : vector<8x64xf32>
    %325 = arith.mulf %309, %317 : vector<8x64xf32>
    %326 = arith.addf %324, %325 : vector<8x64xf32>
    %327 = math.tanh %326 : vector<8x64xf32>
    %328 = arith.mulf %323, %327 : vector<8x64xf32>
    %329 = arith.index_cast %297 : i32 to index
    %c0_86 = arith.constant 0 : index
    %c256_87 = arith.constant 256 : index
    %330 = vector.load %arg9[%329, %c0_86, %c256_87] : memref<8x8x512xf32, #tpu.memory_space<vmem>>, vector<1x8x256xf32>
    %331 = vector.shape_cast %330 : vector<1x8x256xf32> to vector<8x256xf32>
    %332 = arith.truncf %288 : vector<8x64xf32> to vector<8x64xbf16>
    %cst_88 = arith.constant dense<0.000000e+00> : vector<8x256xf32>
    %333 = tpu.matmul %332, %11, %cst_88 {dimension_numbers = #tpu.dot_dimension_numbers<[1], [0], [0], [1], [0, 0, 1, 1], [], []>} : vector<8x64xbf16>, vector<64x256xbf16>, vector<8x256xf32> -> vector<8x256xf32>
    %334 = arith.addf %331, %333 : vector<8x256xf32>
    %335 = vector.extract_strided_slice %334 {offsets = [0, 0], sizes = [8, 64], strides = [1, 1]} : vector<8x256xf32> to vector<8x64xf32>
    %336 = arith.negf %335 : vector<8x64xf32>
    %337 = math.exp %336 : vector<8x64xf32>
    %cst_89 = arith.constant 1.000000e+00 : f32
    %338 = vector.broadcast %cst_89 : f32 to vector<8x64xf32>
    %339 = arith.addf %338, %337 : vector<8x64xf32>
    %340 = arith.divf %338, %339 : vector<8x64xf32>
    %341 = vector.extract_strided_slice %334 {offsets = [0, 64], sizes = [8, 64], strides = [1, 1]} : vector<8x256xf32> to vector<8x64xf32>
    %342 = arith.negf %341 : vector<8x64xf32>
    %343 = math.exp %342 : vector<8x64xf32>
    %cst_90 = arith.constant 1.000000e+00 : f32
    %344 = vector.broadcast %cst_90 : f32 to vector<8x64xf32>
    %345 = arith.addf %344, %343 : vector<8x64xf32>
    %346 = arith.divf %344, %345 : vector<8x64xf32>
    %347 = vector.extract_strided_slice %334 {offsets = [0, 128], sizes = [8, 64], strides = [1, 1]} : vector<8x256xf32> to vector<8x64xf32>
    %348 = math.tanh %347 : vector<8x64xf32>
    %349 = vector.extract_strided_slice %334 {offsets = [0, 192], sizes = [8, 64], strides = [1, 1]} : vector<8x256xf32> to vector<8x64xf32>
    %350 = arith.negf %349 : vector<8x64xf32>
    %351 = math.exp %350 : vector<8x64xf32>
    %cst_91 = arith.constant 1.000000e+00 : f32
    %352 = vector.broadcast %cst_91 : f32 to vector<8x64xf32>
    %353 = arith.addf %352, %351 : vector<8x64xf32>
    %354 = arith.divf %352, %353 : vector<8x64xf32>
    %355 = arith.mulf %346, %286 : vector<8x64xf32>
    %356 = arith.mulf %340, %348 : vector<8x64xf32>
    %357 = arith.addf %355, %356 : vector<8x64xf32>
    %358 = math.tanh %357 : vector<8x64xf32>
    %359 = arith.mulf %354, %358 : vector<8x64xf32>
    %360 = arith.index_cast %c4_i32 : i32 to index
    %c0_92 = arith.constant 0 : index
    %c0_93 = arith.constant 0 : index
    %361 = vector.load %arg10[%360, %c0_92, %c0_93] : memref<8x8x128xf32, #tpu.memory_space<vmem>>, vector<1x8x64xf32>
    %362 = vector.shape_cast %361 : vector<1x8x64xf32> to vector<8x64xf32>
    %363 = vector.shape_cast %328 : vector<8x64xf32> to vector<1x8x64xf32>
    tpu.vector_store %arg10[%360, %c0_92, %c0_93], %363 {strides = array<i32>} : memref<8x8x128xf32, #tpu.memory_space<vmem>>, vector<1x8x64xf32>,
    %364 = arith.index_cast %297 : i32 to index
    %c0_94 = arith.constant 0 : index
    %c64_95 = arith.constant 64 : index
    %365 = vector.load %arg10[%364, %c0_94, %c64_95] : memref<8x8x128xf32, #tpu.memory_space<vmem>>, vector<1x8x64xf32>
    %366 = vector.shape_cast %365 : vector<1x8x64xf32> to vector<8x64xf32>
    %367 = vector.shape_cast %359 : vector<8x64xf32> to vector<1x8x64xf32>
    tpu.vector_store %arg10[%364, %c0_94, %c64_95], %367 {strides = array<i32>} : memref<8x8x128xf32, #tpu.memory_space<vmem>>, vector<1x8x64xf32>,
    %c5_i32 = arith.constant 5 : i32
    %c7_i32_96 = arith.constant 7 : i32
    %368 = arith.subi %c7_i32_96, %c5_i32 : i32
    %369 = arith.index_cast %c5_i32 : i32 to index
    %c0_97 = arith.constant 0 : index
    %c0_98 = arith.constant 0 : index
    %370 = vector.load %arg9[%369, %c0_97, %c0_98] : memref<8x8x512xf32, #tpu.memory_space<vmem>>, vector<1x8x256xf32>
    %371 = vector.shape_cast %370 : vector<1x8x256xf32> to vector<8x256xf32>
    %372 = arith.truncf %328 : vector<8x64xf32> to vector<8x64xbf16>
    %cst_99 = arith.constant dense<0.000000e+00> : vector<8x256xf32>
    %373 = tpu.matmul %372, %10, %cst_99 {dimension_numbers = #tpu.dot_dimension_numbers<[1], [0], [0], [1], [0, 0, 1, 1], [], []>} : vector<8x64xbf16>, vector<64x256xbf16>, vector<8x256xf32> -> vector<8x256xf32>
    %374 = arith.addf %371, %373 : vector<8x256xf32>
    %375 = vector.extract_strided_slice %374 {offsets = [0, 0], sizes = [8, 64], strides = [1, 1]} : vector<8x256xf32> to vector<8x64xf32>
    %376 = arith.negf %375 : vector<8x64xf32>
    %377 = math.exp %376 : vector<8x64xf32>
    %cst_100 = arith.constant 1.000000e+00 : f32
    %378 = vector.broadcast %cst_100 : f32 to vector<8x64xf32>
    %379 = arith.addf %378, %377 : vector<8x64xf32>
    %380 = arith.divf %378, %379 : vector<8x64xf32>
    %381 = vector.extract_strided_slice %374 {offsets = [0, 64], sizes = [8, 64], strides = [1, 1]} : vector<8x256xf32> to vector<8x64xf32>
    %382 = arith.negf %381 : vector<8x64xf32>
    %383 = math.exp %382 : vector<8x64xf32>
    %cst_101 = arith.constant 1.000000e+00 : f32
    %384 = vector.broadcast %cst_101 : f32 to vector<8x64xf32>
    %385 = arith.addf %384, %383 : vector<8x64xf32>
    %386 = arith.divf %384, %385 : vector<8x64xf32>
    %387 = vector.extract_strided_slice %374 {offsets = [0, 128], sizes = [8, 64], strides = [1, 1]} : vector<8x256xf32> to vector<8x64xf32>
    %388 = math.tanh %387 : vector<8x64xf32>
    %389 = vector.extract_strided_slice %374 {offsets = [0, 192], sizes = [8, 64], strides = [1, 1]} : vector<8x256xf32> to vector<8x64xf32>
    %390 = arith.negf %389 : vector<8x64xf32>
    %391 = math.exp %390 : vector<8x64xf32>
    %cst_102 = arith.constant 1.000000e+00 : f32
    %392 = vector.broadcast %cst_102 : f32 to vector<8x64xf32>
    %393 = arith.addf %392, %391 : vector<8x64xf32>
    %394 = arith.divf %392, %393 : vector<8x64xf32>
    %395 = arith.mulf %386, %326 : vector<8x64xf32>
    %396 = arith.mulf %380, %388 : vector<8x64xf32>
    %397 = arith.addf %395, %396 : vector<8x64xf32>
    %398 = math.tanh %397 : vector<8x64xf32>
    %399 = arith.mulf %394, %398 : vector<8x64xf32>
    %400 = arith.index_cast %368 : i32 to index
    %c0_103 = arith.constant 0 : index
    %c256_104 = arith.constant 256 : index
    %401 = vector.load %arg9[%400, %c0_103, %c256_104] : memref<8x8x512xf32, #tpu.memory_space<vmem>>, vector<1x8x256xf32>
    %402 = vector.shape_cast %401 : vector<1x8x256xf32> to vector<8x256xf32>
    %403 = arith.truncf %359 : vector<8x64xf32> to vector<8x64xbf16>
    %cst_105 = arith.constant dense<0.000000e+00> : vector<8x256xf32>
    %404 = tpu.matmul %403, %11, %cst_105 {dimension_numbers = #tpu.dot_dimension_numbers<[1], [0], [0], [1], [0, 0, 1, 1], [], []>} : vector<8x64xbf16>, vector<64x256xbf16>, vector<8x256xf32> -> vector<8x256xf32>
    %405 = arith.addf %402, %404 : vector<8x256xf32>
    %406 = vector.extract_strided_slice %405 {offsets = [0, 0], sizes = [8, 64], strides = [1, 1]} : vector<8x256xf32> to vector<8x64xf32>
    %407 = arith.negf %406 : vector<8x64xf32>
    %408 = math.exp %407 : vector<8x64xf32>
    %cst_106 = arith.constant 1.000000e+00 : f32
    %409 = vector.broadcast %cst_106 : f32 to vector<8x64xf32>
    %410 = arith.addf %409, %408 : vector<8x64xf32>
    %411 = arith.divf %409, %410 : vector<8x64xf32>
    %412 = vector.extract_strided_slice %405 {offsets = [0, 64], sizes = [8, 64], strides = [1, 1]} : vector<8x256xf32> to vector<8x64xf32>
    %413 = arith.negf %412 : vector<8x64xf32>
    %414 = math.exp %413 : vector<8x64xf32>
    %cst_107 = arith.constant 1.000000e+00 : f32
    %415 = vector.broadcast %cst_107 : f32 to vector<8x64xf32>
    %416 = arith.addf %415, %414 : vector<8x64xf32>
    %417 = arith.divf %415, %416 : vector<8x64xf32>
    %418 = vector.extract_strided_slice %405 {offsets = [0, 128], sizes = [8, 64], strides = [1, 1]} : vector<8x256xf32> to vector<8x64xf32>
    %419 = math.tanh %418 : vector<8x64xf32>
    %420 = vector.extract_strided_slice %405 {offsets = [0, 192], sizes = [8, 64], strides = [1, 1]} : vector<8x256xf32> to vector<8x64xf32>
    %421 = arith.negf %420 : vector<8x64xf32>
    %422 = math.exp %421 : vector<8x64xf32>
    %cst_108 = arith.constant 1.000000e+00 : f32
    %423 = vector.broadcast %cst_108 : f32 to vector<8x64xf32>
    %424 = arith.addf %423, %422 : vector<8x64xf32>
    %425 = arith.divf %423, %424 : vector<8x64xf32>
    %426 = arith.mulf %417, %357 : vector<8x64xf32>
    %427 = arith.mulf %411, %419 : vector<8x64xf32>
    %428 = arith.addf %426, %427 : vector<8x64xf32>
    %429 = math.tanh %428 : vector<8x64xf32>
    %430 = arith.mulf %425, %429 : vector<8x64xf32>
    %431 = arith.index_cast %c5_i32 : i32 to index
    %c0_109 = arith.constant 0 : index
    %c0_110 = arith.constant 0 : index
    %432 = vector.load %arg10[%431, %c0_109, %c0_110] : memref<8x8x128xf32, #tpu.memory_space<vmem>>, vector<1x8x64xf32>
    %433 = vector.shape_cast %432 : vector<1x8x64xf32> to vector<8x64xf32>
    %434 = vector.shape_cast %399 : vector<8x64xf32> to vector<1x8x64xf32>
    tpu.vector_store %arg10[%431, %c0_109, %c0_110], %434 {strides = array<i32>} : memref<8x8x128xf32, #tpu.memory_space<vmem>>, vector<1x8x64xf32>,
    %435 = arith.index_cast %368 : i32 to index
    %c0_111 = arith.constant 0 : index
    %c64_112 = arith.constant 64 : index
    %436 = vector.load %arg10[%435, %c0_111, %c64_112] : memref<8x8x128xf32, #tpu.memory_space<vmem>>, vector<1x8x64xf32>
    %437 = vector.shape_cast %436 : vector<1x8x64xf32> to vector<8x64xf32>
    %438 = vector.shape_cast %430 : vector<8x64xf32> to vector<1x8x64xf32>
    tpu.vector_store %arg10[%435, %c0_111, %c64_112], %438 {strides = array<i32>} : memref<8x8x128xf32, #tpu.memory_space<vmem>>, vector<1x8x64xf32>,
    %c6_i32 = arith.constant 6 : i32
    %c7_i32_113 = arith.constant 7 : i32
    %439 = arith.subi %c7_i32_113, %c6_i32 : i32
    %440 = arith.index_cast %c6_i32 : i32 to index
    %c0_114 = arith.constant 0 : index
    %c0_115 = arith.constant 0 : index
    %441 = vector.load %arg9[%440, %c0_114, %c0_115] : memref<8x8x512xf32, #tpu.memory_space<vmem>>, vector<1x8x256xf32>
    %442 = vector.shape_cast %441 : vector<1x8x256xf32> to vector<8x256xf32>
    %443 = arith.truncf %399 : vector<8x64xf32> to vector<8x64xbf16>
    %cst_116 = arith.constant dense<0.000000e+00> : vector<8x256xf32>
    %444 = tpu.matmul %443, %10, %cst_116 {dimension_numbers = #tpu.dot_dimension_numbers<[1], [0], [0], [1], [0, 0, 1, 1], [], []>} : vector<8x64xbf16>, vector<64x256xbf16>, vector<8x256xf32> -> vector<8x256xf32>
    %445 = arith.addf %442, %444 : vector<8x256xf32>
    %446 = vector.extract_strided_slice %445 {offsets = [0, 0], sizes = [8, 64], strides = [1, 1]} : vector<8x256xf32> to vector<8x64xf32>
    %447 = arith.negf %446 : vector<8x64xf32>
    %448 = math.exp %447 : vector<8x64xf32>
    %cst_117 = arith.constant 1.000000e+00 : f32
    %449 = vector.broadcast %cst_117 : f32 to vector<8x64xf32>
    %450 = arith.addf %449, %448 : vector<8x64xf32>
    %451 = arith.divf %449, %450 : vector<8x64xf32>
    %452 = vector.extract_strided_slice %445 {offsets = [0, 64], sizes = [8, 64], strides = [1, 1]} : vector<8x256xf32> to vector<8x64xf32>
    %453 = arith.negf %452 : vector<8x64xf32>
    %454 = math.exp %453 : vector<8x64xf32>
    %cst_118 = arith.constant 1.000000e+00 : f32
    %455 = vector.broadcast %cst_118 : f32 to vector<8x64xf32>
    %456 = arith.addf %455, %454 : vector<8x64xf32>
    %457 = arith.divf %455, %456 : vector<8x64xf32>
    %458 = vector.extract_strided_slice %445 {offsets = [0, 128], sizes = [8, 64], strides = [1, 1]} : vector<8x256xf32> to vector<8x64xf32>
    %459 = math.tanh %458 : vector<8x64xf32>
    %460 = vector.extract_strided_slice %445 {offsets = [0, 192], sizes = [8, 64], strides = [1, 1]} : vector<8x256xf32> to vector<8x64xf32>
    %461 = arith.negf %460 : vector<8x64xf32>
    %462 = math.exp %461 : vector<8x64xf32>
    %cst_119 = arith.constant 1.000000e+00 : f32
    %463 = vector.broadcast %cst_119 : f32 to vector<8x64xf32>
    %464 = arith.addf %463, %462 : vector<8x64xf32>
    %465 = arith.divf %463, %464 : vector<8x64xf32>
    %466 = arith.mulf %457, %397 : vector<8x64xf32>
    %467 = arith.mulf %451, %459 : vector<8x64xf32>
    %468 = arith.addf %466, %467 : vector<8x64xf32>
    %469 = math.tanh %468 : vector<8x64xf32>
    %470 = arith.mulf %465, %469 : vector<8x64xf32>
    %471 = arith.index_cast %439 : i32 to index
    %c0_120 = arith.constant 0 : index
    %c256_121 = arith.constant 256 : index
    %472 = vector.load %arg9[%471, %c0_120, %c256_121] : memref<8x8x512xf32, #tpu.memory_space<vmem>>, vector<1x8x256xf32>
    %473 = vector.shape_cast %472 : vector<1x8x256xf32> to vector<8x256xf32>
    %474 = arith.truncf %430 : vector<8x64xf32> to vector<8x64xbf16>
    %cst_122 = arith.constant dense<0.000000e+00> : vector<8x256xf32>
    %475 = tpu.matmul %474, %11, %cst_122 {dimension_numbers = #tpu.dot_dimension_numbers<[1], [0], [0], [1], [0, 0, 1, 1], [], []>} : vector<8x64xbf16>, vector<64x256xbf16>, vector<8x256xf32> -> vector<8x256xf32>
    %476 = arith.addf %473, %475 : vector<8x256xf32>
    %477 = vector.extract_strided_slice %476 {offsets = [0, 0], sizes = [8, 64], strides = [1, 1]} : vector<8x256xf32> to vector<8x64xf32>
    %478 = arith.negf %477 : vector<8x64xf32>
    %479 = math.exp %478 : vector<8x64xf32>
    %cst_123 = arith.constant 1.000000e+00 : f32
    %480 = vector.broadcast %cst_123 : f32 to vector<8x64xf32>
    %481 = arith.addf %480, %479 : vector<8x64xf32>
    %482 = arith.divf %480, %481 : vector<8x64xf32>
    %483 = vector.extract_strided_slice %476 {offsets = [0, 64], sizes = [8, 64], strides = [1, 1]} : vector<8x256xf32> to vector<8x64xf32>
    %484 = arith.negf %483 : vector<8x64xf32>
    %485 = math.exp %484 : vector<8x64xf32>
    %cst_124 = arith.constant 1.000000e+00 : f32
    %486 = vector.broadcast %cst_124 : f32 to vector<8x64xf32>
    %487 = arith.addf %486, %485 : vector<8x64xf32>
    %488 = arith.divf %486, %487 : vector<8x64xf32>
    %489 = vector.extract_strided_slice %476 {offsets = [0, 128], sizes = [8, 64], strides = [1, 1]} : vector<8x256xf32> to vector<8x64xf32>
    %490 = math.tanh %489 : vector<8x64xf32>
    %491 = vector.extract_strided_slice %476 {offsets = [0, 192], sizes = [8, 64], strides = [1, 1]} : vector<8x256xf32> to vector<8x64xf32>
    %492 = arith.negf %491 : vector<8x64xf32>
    %493 = math.exp %492 : vector<8x64xf32>
    %cst_125 = arith.constant 1.000000e+00 : f32
    %494 = vector.broadcast %cst_125 : f32 to vector<8x64xf32>
    %495 = arith.addf %494, %493 : vector<8x64xf32>
    %496 = arith.divf %494, %495 : vector<8x64xf32>
    %497 = arith.mulf %488, %428 : vector<8x64xf32>
    %498 = arith.mulf %482, %490 : vector<8x64xf32>
    %499 = arith.addf %497, %498 : vector<8x64xf32>
    %500 = math.tanh %499 : vector<8x64xf32>
    %501 = arith.mulf %496, %500 : vector<8x64xf32>
    %502 = arith.index_cast %c6_i32 : i32 to index
    %c0_126 = arith.constant 0 : index
    %c0_127 = arith.constant 0 : index
    %503 = vector.load %arg10[%502, %c0_126, %c0_127] : memref<8x8x128xf32, #tpu.memory_space<vmem>>, vector<1x8x64xf32>
    %504 = vector.shape_cast %503 : vector<1x8x64xf32> to vector<8x64xf32>
    %505 = vector.shape_cast %470 : vector<8x64xf32> to vector<1x8x64xf32>
    tpu.vector_store %arg10[%502, %c0_126, %c0_127], %505 {strides = array<i32>} : memref<8x8x128xf32, #tpu.memory_space<vmem>>, vector<1x8x64xf32>,
    %506 = arith.index_cast %439 : i32 to index
    %c0_128 = arith.constant 0 : index
    %c64_129 = arith.constant 64 : index
    %507 = vector.load %arg10[%506, %c0_128, %c64_129] : memref<8x8x128xf32, #tpu.memory_space<vmem>>, vector<1x8x64xf32>
    %508 = vector.shape_cast %507 : vector<1x8x64xf32> to vector<8x64xf32>
    %509 = vector.shape_cast %501 : vector<8x64xf32> to vector<1x8x64xf32>
    tpu.vector_store %arg10[%506, %c0_128, %c64_129], %509 {strides = array<i32>} : memref<8x8x128xf32, #tpu.memory_space<vmem>>, vector<1x8x64xf32>,
    %c7_i32_130 = arith.constant 7 : i32
    %c7_i32_131 = arith.constant 7 : i32
    %510 = arith.subi %c7_i32_131, %c7_i32_130 : i32
    %511 = arith.index_cast %c7_i32_130 : i32 to index
    %c0_132 = arith.constant 0 : index
    %c0_133 = arith.constant 0 : index
    %512 = vector.load %arg9[%511, %c0_132, %c0_133] : memref<8x8x512xf32, #tpu.memory_space<vmem>>, vector<1x8x256xf32>
    %513 = vector.shape_cast %512 : vector<1x8x256xf32> to vector<8x256xf32>
    %514 = arith.truncf %470 : vector<8x64xf32> to vector<8x64xbf16>
    %cst_134 = arith.constant dense<0.000000e+00> : vector<8x256xf32>
    %515 = tpu.matmul %514, %10, %cst_134 {dimension_numbers = #tpu.dot_dimension_numbers<[1], [0], [0], [1], [0, 0, 1, 1], [], []>} : vector<8x64xbf16>, vector<64x256xbf16>, vector<8x256xf32> -> vector<8x256xf32>
    %516 = arith.addf %513, %515 : vector<8x256xf32>
    %517 = vector.extract_strided_slice %516 {offsets = [0, 0], sizes = [8, 64], strides = [1, 1]} : vector<8x256xf32> to vector<8x64xf32>
    %518 = arith.negf %517 : vector<8x64xf32>
    %519 = math.exp %518 : vector<8x64xf32>
    %cst_135 = arith.constant 1.000000e+00 : f32
    %520 = vector.broadcast %cst_135 : f32 to vector<8x64xf32>
    %521 = arith.addf %520, %519 : vector<8x64xf32>
    %522 = arith.divf %520, %521 : vector<8x64xf32>
    %523 = vector.extract_strided_slice %516 {offsets = [0, 64], sizes = [8, 64], strides = [1, 1]} : vector<8x256xf32> to vector<8x64xf32>
    %524 = arith.negf %523 : vector<8x64xf32>
    %525 = math.exp %524 : vector<8x64xf32>
    %cst_136 = arith.constant 1.000000e+00 : f32
    %526 = vector.broadcast %cst_136 : f32 to vector<8x64xf32>
    %527 = arith.addf %526, %525 : vector<8x64xf32>
    %528 = arith.divf %526, %527 : vector<8x64xf32>
    %529 = vector.extract_strided_slice %516 {offsets = [0, 128], sizes = [8, 64], strides = [1, 1]} : vector<8x256xf32> to vector<8x64xf32>
    %530 = math.tanh %529 : vector<8x64xf32>
    %531 = vector.extract_strided_slice %516 {offsets = [0, 192], sizes = [8, 64], strides = [1, 1]} : vector<8x256xf32> to vector<8x64xf32>
    %532 = arith.negf %531 : vector<8x64xf32>
    %533 = math.exp %532 : vector<8x64xf32>
    %cst_137 = arith.constant 1.000000e+00 : f32
    %534 = vector.broadcast %cst_137 : f32 to vector<8x64xf32>
    %535 = arith.addf %534, %533 : vector<8x64xf32>
    %536 = arith.divf %534, %535 : vector<8x64xf32>
    %537 = arith.mulf %528, %468 : vector<8x64xf32>
    %538 = arith.mulf %522, %530 : vector<8x64xf32>
    %539 = arith.addf %537, %538 : vector<8x64xf32>
    %540 = math.tanh %539 : vector<8x64xf32>
    %541 = arith.mulf %536, %540 : vector<8x64xf32>
    %542 = arith.index_cast %510 : i32 to index
    %c0_138 = arith.constant 0 : index
    %c256_139 = arith.constant 256 : index
    %543 = vector.load %arg9[%542, %c0_138, %c256_139] : memref<8x8x512xf32, #tpu.memory_space<vmem>>, vector<1x8x256xf32>
    %544 = vector.shape_cast %543 : vector<1x8x256xf32> to vector<8x256xf32>
    %545 = arith.truncf %501 : vector<8x64xf32> to vector<8x64xbf16>
    %cst_140 = arith.constant dense<0.000000e+00> : vector<8x256xf32>
    %546 = tpu.matmul %545, %11, %cst_140 {dimension_numbers = #tpu.dot_dimension_numbers<[1], [0], [0], [1], [0, 0, 1, 1], [], []>} : vector<8x64xbf16>, vector<64x256xbf16>, vector<8x256xf32> -> vector<8x256xf32>
    %547 = arith.addf %544, %546 : vector<8x256xf32>
    %548 = vector.extract_strided_slice %547 {offsets = [0, 0], sizes = [8, 64], strides = [1, 1]} : vector<8x256xf32> to vector<8x64xf32>
    %549 = arith.negf %548 : vector<8x64xf32>
    %550 = math.exp %549 : vector<8x64xf32>
    %cst_141 = arith.constant 1.000000e+00 : f32
    %551 = vector.broadcast %cst_141 : f32 to vector<8x64xf32>
    %552 = arith.addf %551, %550 : vector<8x64xf32>
    %553 = arith.divf %551, %552 : vector<8x64xf32>
    %554 = vector.extract_strided_slice %547 {offsets = [0, 64], sizes = [8, 64], strides = [1, 1]} : vector<8x256xf32> to vector<8x64xf32>
    %555 = arith.negf %554 : vector<8x64xf32>
    %556 = math.exp %555 : vector<8x64xf32>
    %cst_142 = arith.constant 1.000000e+00 : f32
    %557 = vector.broadcast %cst_142 : f32 to vector<8x64xf32>
    %558 = arith.addf %557, %556 : vector<8x64xf32>
    %559 = arith.divf %557, %558 : vector<8x64xf32>
    %560 = vector.extract_strided_slice %547 {offsets = [0, 128], sizes = [8, 64], strides = [1, 1]} : vector<8x256xf32> to vector<8x64xf32>
    %561 = math.tanh %560 : vector<8x64xf32>
    %562 = vector.extract_strided_slice %547 {offsets = [0, 192], sizes = [8, 64], strides = [1, 1]} : vector<8x256xf32> to vector<8x64xf32>
    %563 = arith.negf %562 : vector<8x64xf32>
    %564 = math.exp %563 : vector<8x64xf32>
    %cst_143 = arith.constant 1.000000e+00 : f32
    %565 = vector.broadcast %cst_143 : f32 to vector<8x64xf32>
    %566 = arith.addf %565, %564 : vector<8x64xf32>
    %567 = arith.divf %565, %566 : vector<8x64xf32>
    %568 = arith.mulf %559, %499 : vector<8x64xf32>
    %569 = arith.mulf %553, %561 : vector<8x64xf32>
    %570 = arith.addf %568, %569 : vector<8x64xf32>
    %571 = math.tanh %570 : vector<8x64xf32>
    %572 = arith.mulf %567, %571 : vector<8x64xf32>
    %573 = arith.index_cast %c7_i32_130 : i32 to index
    %c0_144 = arith.constant 0 : index
    %c0_145 = arith.constant 0 : index
    %574 = vector.load %arg10[%573, %c0_144, %c0_145] : memref<8x8x128xf32, #tpu.memory_space<vmem>>, vector<1x8x64xf32>
    %575 = vector.shape_cast %574 : vector<1x8x64xf32> to vector<8x64xf32>
    %576 = vector.shape_cast %541 : vector<8x64xf32> to vector<1x8x64xf32>
    tpu.vector_store %arg10[%573, %c0_144, %c0_145], %576 {strides = array<i32>} : memref<8x8x128xf32, #tpu.memory_space<vmem>>, vector<1x8x64xf32>,
    %577 = arith.index_cast %510 : i32 to index
    %c0_146 = arith.constant 0 : index
    %c64_147 = arith.constant 64 : index
    %578 = vector.load %arg10[%577, %c0_146, %c64_147] : memref<8x8x128xf32, #tpu.memory_space<vmem>>, vector<1x8x64xf32>
    %579 = vector.shape_cast %578 : vector<1x8x64xf32> to vector<8x64xf32>
    %580 = vector.shape_cast %572 : vector<8x64xf32> to vector<1x8x64xf32>
    tpu.vector_store %arg10[%577, %c0_146, %c64_147], %580 {strides = array<i32>} : memref<8x8x128xf32, #tpu.memory_space<vmem>>, vector<1x8x64xf32>,
    %c8_i32 = arith.constant 8 : i32
    %c0_148 = arith.constant 0 : index
    %c0_149 = arith.constant 0 : index
    %c0_150 = arith.constant 0 : index
    %581 = vector.load %arg10[%c0_148, %c0_149, %c0_150] : memref<8x8x128xf32, #tpu.memory_space<vmem>>, vector<8x8x128xf32>
    %582 = arith.truncf %581 : vector<8x8x128xf32> to vector<8x8x128xbf16>
    %c0_151 = arith.constant 0 : index
    %c0_152 = arith.constant 0 : index
    %c0_153 = arith.constant 0 : index
    %583 = vector.load %arg6[%c0_151, %c0_152, %c0_153] : memref<8x8x128xbf16, #tpu.memory_space<vmem>>, vector<8x8x128xbf16>
    tpu.vector_store %arg6[%c0_151, %c0_152, %c0_153], %582 {strides = array<i32>} : memref<8x8x128xbf16, #tpu.memory_space<vmem>>, vector<8x8x128xbf16>,
    %c0_154 = arith.constant 0 : index
    %c0_155 = arith.constant 0 : index
    %c0_156 = arith.constant 0 : index
    %584 = vector.load %arg7[%c0_154, %c0_155, %c0_156] : memref<2x8x64xf32, #tpu.memory_space<vmem>>, vector<1x8x64xf32>
    %585 = vector.shape_cast %584 : vector<1x8x64xf32> to vector<8x64xf32>
    %586 = vector.shape_cast %541 : vector<8x64xf32> to vector<1x8x64xf32>
    tpu.vector_store %arg7[%c0_154, %c0_155, %c0_156], %586 {strides = array<i32>} : memref<2x8x64xf32, #tpu.memory_space<vmem>>, vector<1x8x64xf32>,
    %c1 = arith.constant 1 : index
    %c0_157 = arith.constant 0 : index
    %c0_158 = arith.constant 0 : index
    %587 = vector.load %arg7[%c1, %c0_157, %c0_158] : memref<2x8x64xf32, #tpu.memory_space<vmem>>, vector<1x8x64xf32>
    %588 = vector.shape_cast %587 : vector<1x8x64xf32> to vector<8x64xf32>
    %589 = vector.shape_cast %572 : vector<8x64xf32> to vector<1x8x64xf32>
    tpu.vector_store %arg7[%c1, %c0_157, %c0_158], %589 {strides = array<i32>} : memref<2x8x64xf32, #tpu.memory_space<vmem>>, vector<1x8x64xf32>,
    %c0_159 = arith.constant 0 : index
    %c0_160 = arith.constant 0 : index
    %c0_161 = arith.constant 0 : index
    %590 = vector.load %arg8[%c0_159, %c0_160, %c0_161] : memref<2x8x64xf32, #tpu.memory_space<vmem>>, vector<1x8x64xf32>
    %591 = vector.shape_cast %590 : vector<1x8x64xf32> to vector<8x64xf32>
    %592 = vector.shape_cast %539 : vector<8x64xf32> to vector<1x8x64xf32>
    tpu.vector_store %arg8[%c0_159, %c0_160, %c0_161], %592 {strides = array<i32>} : memref<2x8x64xf32, #tpu.memory_space<vmem>>, vector<1x8x64xf32>,
    %c1_162 = arith.constant 1 : index
    %c0_163 = arith.constant 0 : index
    %c0_164 = arith.constant 0 : index
    %593 = vector.load %arg8[%c1_162, %c0_163, %c0_164] : memref<2x8x64xf32, #tpu.memory_space<vmem>>, vector<1x8x64xf32>
    %594 = vector.shape_cast %593 : vector<1x8x64xf32> to vector<8x64xf32>
    %595 = vector.shape_cast %570 : vector<8x64xf32> to vector<1x8x64xf32>
    tpu.vector_store %arg8[%c1_162, %c0_163, %c0_164], %595 {strides = array<i32>} : memref<2x8x64xf32, #tpu.memory_space<vmem>>, vector<1x8x64xf32>,
    return
  }
  func.func @transform_0(%arg0: i32) -> (i32, i32, i32) {
    %c0_i32 = arith.constant 0 : i32
    %c0_i32_0 = arith.constant 0 : i32
    %c0_i32_1 = arith.constant 0 : i32
    %c0_i32_2 = arith.constant 0 : i32
    return %c0_i32, %c0_i32_0, %c0_i32_1 : i32, i32, i32
  }
  func.func @transform_1(%arg0: i32) -> (i32, i32) {
    %c0_i32 = arith.constant 0 : i32
    %c0_i32_0 = arith.constant 0 : i32
    %c0_i32_1 = arith.constant 0 : i32
    return %c0_i32, %c0_i32_0 : i32, i32
  }
  func.func @transform_2(%arg0: i32) -> (i32, i32) {
    %c0_i32 = arith.constant 0 : i32
    %c0_i32_0 = arith.constant 0 : i32
    %c0_i32_1 = arith.constant 0 : i32
    return %c0_i32, %c0_i32_0 : i32, i32
  }
  func.func @transform_3(%arg0: i32) -> (i32, i32) {
    %c0_i32 = arith.constant 0 : i32
    %c0_i32_0 = arith.constant 0 : i32
    %c0_i32_1 = arith.constant 0 : i32
    return %c0_i32, %c0_i32_0 : i32, i32
  }
  func.func @transform_4(%arg0: i32) -> (i32, i32) {
    %c0_i32 = arith.constant 0 : i32
    %c0_i32_0 = arith.constant 0 : i32
    %c0_i32_1 = arith.constant 0 : i32
    return %c0_i32, %c0_i32_0 : i32, i32
  }
  func.func @transform_5(%arg0: i32) -> (i32, i32, i32) {
    %c0_i32 = arith.constant 0 : i32
    %c0_i32_0 = arith.constant 0 : i32
    %c0_i32_1 = arith.constant 0 : i32
    %c0_i32_2 = arith.constant 0 : i32
    return %c0_i32, %c0_i32_0, %c0_i32_1 : i32, i32, i32
  }
  func.func @transform_6(%arg0: i32) -> (i32, i32, i32) {
    %c0_i32 = arith.constant 0 : i32
    %c0_i32_0 = arith.constant 0 : i32
    %c0_i32_1 = arith.constant 0 : i32
    %c0_i32_2 = arith.constant 0 : i32
    return %c0_i32, %c0_i32_0, %c0_i32_1 : i32, i32, i32
  }
  func.func @transform_7(%arg0: i32) -> (i32, i32, i32) {
    %c0_i32 = arith.constant 0 : i32
    %c0_i32_0 = arith.constant 0 : i32
    %c0_i32_1 = arith.constant 0 : i32
    %c0_i32_2 = arith.constant 0 : i32
    return %c0_i32, %c0_i32_0, %c0_i32_1 : i32, i32, i32
  }
}

</mosaic_0001>

<bundles_post_ra>
// kernel: tpu_custom_call.1
= control target key start
LH: loop header
LB: loop body
LE: loop exit
PB: predicated region body
PF: predicated region fallthrough
CT: control target
= control target key end

     0   :  { %13 = vsyncpa [#allocation5], 0  ;;  %s2910_s0 = inlined_call_operand.hbm [shape: f32[8,8,30], index: 0, kind: input, shape index: {}]   ;;  %s2911_s1 = inlined_call_operand.hbm [shape: bf16[30,512], index: 1, kind: input, shape index: {}]   ;;  %s2912_s2 = inlined_call_operand.hbm [shape: bf16[64,256], index: 2, kind: input, shape index: {}]   ;;  %s2913_s3 = inlined_call_operand.hbm [shape: bf16[64,256], index: 3, kind: input, shape index: {}]   ;;  %s2914_s4 = inlined_call_operand.vmem [shape: f32[1,512], index: 4, kind: input, shape index: {}]   ;;  %s2915_s5 = inlined_call_operand.hbm [shape: bf16[8,8,128], index: 5, kind: output, shape index: {0}]   ;;  %s2916_s6 = inlined_call_operand.hbm [shape: f32[2,8,64], index: 6, kind: output, shape index: {1}]   ;;  %s2917_s7 = inlined_call_operand.hbm [shape: f32[2,8,64], index: 7, kind: output, shape index: {2}]  }
   0x1   :  { %14 = vsyncpa [#allocation8], 0 }
   0x2   :  { %15 = vsyncpa [#allocation11], 0 }
   0x3   :  { %16 = vsyncpa [#allocation6], 0 }
   0x4   :  { %17 = vsyncpa [#allocation14], 0  ;;  %s2299_s24 = smov [#allocation7]  }
   0x5   :  { %s35_s25 = sshll.u32 %s2299_s24, 4  ;;  %s36_s25 = int_to_ptr.vmem [resolvable:$true] %s35_s25 }
   0x6   :  { %s2157_s26 = scalar_lea.vmem %s36_s25, 1024  ;;  %p2162_p1 = scmp.lt.s32.totalorder %s36_s25, %s36_s25 }
   0x7   :  { %p2158_p0 = scmp.ne.s32.totalorder %s36_s25, %s2157_s26  ;;  %p2163_p2 = scmp.lt.s32.totalorder %s2157_s26, %s2157_s26 }
   0x9   :  { %p2164_p3 = por %p2163_p2, %p2162_p1 }
   0xb   :  { %p2165_p4 = pnand %p2164_p3, %p2158_p0 }
   0xd   :  { %2168 = shalt.err (!%p2165_p4)
}
   0xe   :  { %s2300_s27 = smov 256   ;;  %s2301_s28 = smov 16  }
   0xf   :  { %41 = dma.hbm_to_vmem [thread:$0]  %s2911_s1, 1024, %s36_s25, [#allocation8], %s2300_s27, %s2300_s27, %s2301_s28  }
  0x10   :  { %s2302_s8 = smov [#allocation4]  }
  0x11   :  { %s23_s9 = sshll.u32 %s2302_s8, 4  ;;  %s24_s9 = int_to_ptr.vmem [resolvable:$true] %s23_s9 }
  0x12   :  { %s2177_s10 = scalar_lea.vmem %s24_s9, 1024  ;;  %p2182_p6 = scmp.lt.s32.totalorder %s24_s9, %s24_s9 }
  0x13   :  { %p2178_p5 = scmp.ne.s32.totalorder %s24_s9, %s2177_s10  ;;  %p2183_p7 = scmp.lt.s32.totalorder %s2177_s10, %s2177_s10 }
  0x15   :  { %p2184_p8 = por %p2183_p7, %p2182_p6 }
  0x17   :  { %p2185_p9 = pnand %p2184_p8, %p2178_p5 }
  0x19   :  { %2188 = shalt.err (!%p2185_p9)
}
  0x1a   :  { %s2303_s11 = smov 128   ;;  %s2304_s12 = smov 8  }
  0x1b   :  { %29 = dma.hbm_to_vmem [thread:$0]  %s2910_s0, 1024, %s24_s9, [#allocation5], %s2303_s11, %s2303_s11, %s2304_s12  }
  0x1c   :  { %s2305_s1 = smov [#allocation9]   ;;  %s2306_s16 = smov [#allocation10]  }
  0x1d   :  { %s47_s15 = sshll.u32 %s2305_s1, 4  ;;  %s59_s17 = sshll.u32 %s2306_s16, 4  ;;  %s48_s15 = int_to_ptr.vmem [resolvable:$true] %s47_s15  ;;  %s60_s17 = int_to_ptr.vmem [resolvable:$true] %s59_s17 }
  0x1e   :  { %s2197_s18 = scalar_lea.vmem %s48_s15, 1024  ;;  %p2202_p11 = scmp.lt.s32.totalorder %s48_s15, %s48_s15 }
  0x1f   :  { %p2198_p10 = scmp.ne.s32.totalorder %s48_s15, %s2197_s18  ;;  %p2203_p12 = scmp.lt.s32.totalorder %s2197_s18, %s2197_s18 }
  0x21   :  { %p2204_p13 = por %p2203_p12, %p2202_p11 }
  0x23   :  { %p2205_p0 = pnand %p2204_p13, %p2198_p10 }
  0x25   :  { %2208 = shalt.err (!%p2205_p0)
}
  0x26   :  { %53 = dma.hbm_to_vmem [thread:$0]  %s2912_s2, 1024, %s48_s15, [#allocation8], %s2303_s11, %s2303_s11, %s2304_s12  }
  0x27   :  { %s2217_s0 = scalar_lea.vmem %s60_s17, 1024  ;;  %p2222_p2 = scmp.lt.s32.totalorder %s60_s17, %s60_s17 }
  0x28   :  { %p2218_p1 = scmp.ne.s32.totalorder %s60_s17, %s2217_s0  ;;  %p2223_p3 = scmp.lt.s32.totalorder %s2217_s0, %s2217_s0 }
  0x2a   :  { %p2224_p4 = por %p2223_p3, %p2222_p2 }
  0x2c   :  { %p2225_p5 = pnand %p2224_p4, %p2218_p1 }
  0x2e   :  { %2228 = shalt.err (!%p2225_p5)
}
  0x2f   :  { %65 = dma.hbm_to_vmem [thread:$0]  %s2913_s3, 1024, %s60_s17, [#allocation11], %s2303_s11, %s2303_s11, %s2304_s12  }
  0x30   :  { %2289 = dma.done.wait [#allocation5], 1024  }
  0x31   :  { %2290 = vsyncadd [#allocation5], 4294966272 }
  0x32   :  { %2291 = dma.done.wait [#allocation8], 2048  }
  0x33   :  { %2292 = vsyncadd [#allocation8], 4294965248 }
  0x34   :  { %2293 = dma.done.wait [#allocation11], 1024  }
  0x35   :  { %2294 = vsyncadd [#allocation11], 4294966272  ;;  %v2918_v0 = vmov 0   ;;  %vm172_vm0 = vcmask 1046528   ;;  %v1911_v5 = vld [vmem:[#allocation7 + $0x4] ss:$16 sps:$4 sm:$0xff]   ;;  %v103_v39 = vlaneseq }
  0x36   :  { %217 = vmatprep.mubr.bf16.mxu0 %v2918_v0  ;;  %290 = vmatprep.mubr.bf16.mxu1 %v2918_v0  ;;  %v1905_v1 = vld [vmem:[#allocation7 + $0x24] ss:$16 sps:$4 sm:$0x7f]   ;;  %v1907_v2 = vld [vmem:[#allocation7 + $0x2c] ss:$16 sps:$4 sm:$0x7f]  }
  0x37   :  { %1796 = vmatprep.subr.msk.bf16.mxu0 %vm172_vm0, %v1905_v1  ;;  %v1909_v3 = vld [vmem:[#allocation7 + $0x20] ss:$16 sps:$4 sm:$0x7f]   ;;  %v1910_v4 = vld [vmem:[#allocation7 + $0x28] ss:$16 sps:$4 sm:$0x7f]   ;;  %1801 = vmatprep.subr.msk.bf16.mxu1 %vm172_vm0, %v1907_v2 }
  0x38   :  { %v174_v6 = vsel %vm172_vm0, %v1909_v3, 0  ;;  %v180_v7 = vsel %vm172_vm0, %v1910_v4, 0  ;;  %v1913_v8 = vld [vmem:[#allocation7 + $0xc] ss:$16 sps:$4 sm:$0xff]   ;;  %v1915_v9 = vld [vmem:[#allocation7] ss:$16 sps:$4 sm:$0xff]  }
  0x39   :  { %198 = vmatpush1.bf16.msra.mxu0 %v174_v6  ;;  %271 = vmatpush1.bf16.msra.mxu1 %v180_v7  ;;  %v1916_v10 = vld [vmem:[#allocation7 + $0x8] ss:$16 sps:$4 sm:$0xff]   ;;  %v81_v11 = vld [vmem:[#allocation4] sm:$0xff]  ;;  %v2376_v13 = vld [vmem:[#allocation9 + $0x34] ss:$8 sps:$4 sm:$0xff]   ;;  %vm159_vm1 = vcmask 244736  }
  0x3a   :  { %199 = vmatprep.subr.bf16.mxu0 %v1911_v5  ;;  %272 = vmatprep.subr.bf16.mxu1 %v1913_v8  ;;  %v82_v12 = vld [vmem:[#allocation4 + $0x8] sm:$0xff]  ;;  %v2378_v15 = vld [vmem:[#allocation10 + $0x34] ss:$8 sps:$4 sm:$0xff]   ;;  %v2380_v16 = vld [vmem:[#allocation9 + $0x30] ss:$8 sps:$4 sm:$0xff]   ;;  %v104_v40 = vshrl.u32 %v103_v39, 7 }
  0x3b   :  { %v89_v14 = vpack.c.bf16 %v82_v12, %v81_v11  ;;  %v2384_v17 = vld [vmem:[#allocation10 + $0x30] ss:$8 sps:$4 sm:$0xff]   ;;  %v2386_v18 = vld [vmem:[#allocation9 + $0x24] ss:$8 sps:$4 sm:$0xff]   ;;  %v2392_v22 = vld [vmem:[#allocation9 + $0x20] ss:$8 sps:$4 sm:$0xff]  }
  0x3c   :  { %v2388_v19 = vld [vmem:[#allocation10 + $0x24] ss:$8 sps:$4 sm:$0xff]   ;;  %v83_v20 = vld [vmem:[#allocation4 + $0x10] sm:$0xff]  ;;  %v84_v21 = vld [vmem:[#allocation4 + $0x18] sm:$0xff]  ;;  %v113_v41 = vsub.s32 2, %v104_v40  ;;  %v117_v42 = vsub.s32 3, %v104_v40 }
  0x3d   :  { %200 = vmatpush1.bf16.msra.mxu0 %v1915_v9  ;;  %273 = vmatpush1.bf16.msra.mxu1 %v1916_v10  ;;  %v2396_v23 = vld [vmem:[#allocation10 + $0x20] ss:$8 sps:$4 sm:$0xff]   ;;  %v2400_v24 = vld [vmem:[#allocation9 + $0x14] ss:$8 sps:$4 sm:$0xff]   ;;  %v90_v26 = vpack.c.bf16 %v84_v21, %v83_v20  ;;  %v2409_v27 = vld [vmem:[#allocation9 + $0x10] ss:$8 sps:$4 sm:$0xff]  }
  0x3e   :  { %433 = vmatprep.subr.bf16.mxu0 %v2376_v13  ;;  %541 = vmatprep.subr.bf16.mxu1 %v2378_v15  ;;  %v2404_v25 = vld [vmem:[#allocation10 + $0x14] ss:$8 sps:$4 sm:$0xff]   ;;  %v2411_v28 = vld [vmem:[#allocation10 + $0x10] ss:$8 sps:$4 sm:$0xff]   ;;  %v2414_v29 = vld [vmem:[#allocation9 + $0x4] ss:$8 sps:$4 sm:$0xff]  }
  0x3f   :  { %v2416_v30 = vld [vmem:[#allocation10 + $0x4] ss:$8 sps:$4 sm:$0xff]   ;;  %v2424_v33 = vld [vmem:[#allocation9] ss:$8 sps:$4 sm:$0xff]   ;;  %v87_v36 = vld [vmem:[#allocation4 + $0x30] sm:$0xff]  ;;  %v105_v45 = vsub.s32 0, %v104_v40 }
  0x40   :  { %1797 = vmatmul.mubr.msk.bf16.vlgmr.msra.gmra.mxu0 %vm159_vm1, %v89_v14  ;;  %1802 = vmatmul.mubr.msk.bf16.vlgmr.msra.gmra.mxu1 %vm159_vm1, %v89_v14  ;;  %v85_v31 = vld [vmem:[#allocation4 + $0x20] sm:$0xff]  ;;  %v86_v32 = vld [vmem:[#allocation4 + $0x28] sm:$0xff]  ;;  %v88_v37 = vld [vmem:[#allocation4 + $0x38] sm:$0xff]  ;;  %v109_v50 = vsub.s32 1, %v104_v40  ;;  %vm604_vm2 = vcmask 1048064   ;;  %vm421_vm3 = vcmask 523264  }
  0x41   :  { %434 = vmatpush1.bf16.msra.mxu0 %v2380_v16  ;;  %227 = vmatprep.mubr.bf16.mxu0 %v2918_v0  ;;  %v2426_v34 = vld [vmem:[#allocation10] ss:$8 sps:$4 sm:$0xff]   ;;  %v91_v35 = vpack.c.bf16 %v86_v32, %v85_v31  ;;  %v92_v38 = vpack.c.bf16 %v88_v37, %v87_v36  ;;  %s2309_s23 = smov [#allocation13]   ;;  %s2310_s25 = smov [#allocation15]  }
  0x42   :  { %300 = vmatprep.mubr.bf16.mxu1 %v2918_v0  ;;  %542 = vmatpush1.bf16.msra.mxu1 %v2384_v17  ;;  %v101_v43 = vld [vmem:[%s2914_s4] sm:$0xf]  ;;  %s2308_s4 = smov 64   ;;  %s1755_s24 = sshll.u32 %s2309_s23, 4  ;;  %s1756_s24 = int_to_ptr.vmem [resolvable:$true] %s1755_s24 }
  0x43   :  { %435 = vmatprep.subr.bf16.mxu0 %v2386_v18  ;;  %543 = vmatprep.subr.bf16.mxu1 %v2388_v19  ;;  %v2465_v44 = vrot.slane %v101_v43, %v113_v41  ;;  %v2467_v46 = vrot.slane %v101_v43, %v117_v42  ;;  %v106_v53 = vrot.slane %v101_v43, %v105_v45  ;;  %s1767_s26 = sshll.u32 %s2310_s25, 4  ;;  %s2311_s27 = smov [#allocation12]   ;;  %s1768_s26 = int_to_ptr.vmem [resolvable:$true] %s1767_s26 }
  0x44   :  { %v2479_v57 = vrot.slane %v101_v43, %v109_v50  ;;  %s1743_s28 = sshll.u32 %s2311_s27, 4  ;;  %s2229_s29 = scalar_lea.vmem %s1756_s24, 256  ;;  %s1744_s28 = int_to_ptr.vmem [resolvable:$true] %s1743_s28 }
  0x45   :  { %436 = vmatpush1.bf16.msra.mxu0 %v2392_v22  ;;  %p2230_p6 = scmp.ne.s32.totalorder %s1756_s24, %s2229_s29  ;;  %p2234_p7 = scmp.lt.s32.totalorder %s1756_s24, %s1756_s24 }
  0x46   :  { %544 = vmatpush1.bf16.msra.mxu1 %v2396_v23  ;;  %437 = vmatprep.subr.bf16.mxu0 %v2400_v24  ;;  %p2235_p8 = scmp.lt.s32.totalorder %s2229_s29, %s2229_s29 }
  0x47   :  { %545 = vmatprep.subr.bf16.mxu1 %v2404_v25 }
  0x48   :  { %1798 = vmatmul.mubr.msk.bf16.gmra.mxu0 %vm159_vm1, %v90_v26  ;;  %1803 = vmatmul.mubr.msk.bf16.gmra.mxu1 %vm159_vm1, %v90_v26  ;;  %p2236_p9 = por %p2235_p8, %p2234_p7 }
  0x49   :  { %237 = vmatprep.mubr.bf16.mxu0 %v2918_v0  ;;  %310 = vmatprep.mubr.bf16.mxu1 %v2918_v0 }
  0x4a   :  { %438 = vmatpush1.bf16.msra.mxu0 %v2409_v27  ;;  %546 = vmatpush1.bf16.msra.mxu1 %v2411_v28  ;;  %p2237_p10 = pnand %p2236_p9, %p2230_p6 }
  0x4b   :  { %439 = vmatprep.subr.bf16.mxu0 %v2414_v29  ;;  %547 = vmatprep.subr.bf16.mxu1 %v2416_v30 }
  0x4e   :  { %440 = vmatpush1.bf16.msra.mxu0 %v2424_v33  ;;  %548 = vmatpush1.bf16.msra.mxu1 %v2426_v34 }
  0x4f   :  { %624 = vmatprep.subr.bf16.mxu0 %v2376_v13  ;;  %699 = vmatprep.subr.bf16.mxu1 %v2378_v15 }
  0x50   :  { %1799 = vmatmul.mubr.msk.bf16.gmra.mxu0 %vm159_vm1, %v91_v35  ;;  %1804 = vmatmul.mubr.msk.bf16.gmra.mxu1 %vm159_vm1, %v91_v35 }
  0x51   :  { %247 = vmatprep.mubr.bf16.mxu0 %v2918_v0  ;;  %320 = vmatprep.mubr.bf16.mxu1 %v2918_v0 }
  0x58   :  { %1800 = vmatmul.mubr.msk.bf16.gmra.mxu0 %vm159_vm1, %v92_v38  ;;  %1805 = vmatmul.mubr.msk.bf16.gmra.mxu1 %vm159_vm1, %v92_v38 }
  0x59   :  { %457 = vmatprep.mubr.bf16.mxu0 %v2918_v0  ;;  %565 = vmatprep.mubr.bf16.mxu1 %v2918_v0 }
  0x60   :  { %458 = vmatmul.mubr.bf16.vlgmr.msra.gmra.mxu0 %v2918_v0  ;;  %566 = vmatmul.mubr.bf16.vlgmr.msra.gmra.mxu1 %v2918_v0 }
  0x61   :  { %625 = vmatpush1.bf16.msra.mxu0 %v2380_v16  ;;  %700 = vmatpush1.bf16.msra.mxu1 %v2384_v17 }
  0x62   :  { %626 = vmatprep.subr.bf16.mxu0 %v2386_v18  ;;  %701 = vmatprep.subr.bf16.mxu1 %v2388_v19 }
  0x63   :  { %648 = vmatprep.mubr.bf16.mxu0 %v2918_v0  ;;  %723 = vmatprep.mubr.bf16.mxu1 %v2918_v0 }
  0x65   :  { %627 = vmatpush1.bf16.msra.mxu0 %v2392_v22  ;;  %702 = vmatpush1.bf16.msra.mxu1 %v2396_v23 }
  0x66   :  { %628 = vmatprep.subr.bf16.mxu0 %v2400_v24  ;;  %703 = vmatprep.subr.bf16.mxu1 %v2404_v25 }
  0x69   :  { %629 = vmatpush1.bf16.msra.mxu0 %v2409_v27  ;;  %704 = vmatpush1.bf16.msra.mxu1 %v2411_v28 }
  0x6a   :  { %630 = vmatprep.subr.bf16.mxu0 %v2414_v29  ;;  %705 = vmatprep.subr.bf16.mxu1 %v2416_v30 }
  0x6d   :  { %631 = vmatpush1.bf16.msra.mxu0 %v2424_v33  ;;  %706 = vmatpush1.bf16.msra.mxu1 %v2426_v34 }
  0x6e   :  { %782 = vmatprep.subr.bf16.mxu0 %v2376_v13  ;;  %857 = vmatprep.subr.bf16.mxu1 %v2378_v15 }
 0x100   :  { %v2469_v47 = vpop.f32.mrf.mxu0  ;;  %v292_v48 = vpop.f32.mrf.mxu1 }
 0x101   :  { %v2472_v49 = vadd.f32 %v292_v48, %v2465_v44 }
 0x102   :  { %v2474_v51 = vpop.f32.mrf.mxu0  ;;  %v294_v52 = vpop.f32.mrf.mxu1 }
 0x103   :  { %2920 = vst [vmem:[#allocation21_spill] sm:$0xff] %v2472_v49  ;;  %v2477_v54 = vadd.f32 %v294_v52, %v2467_v46 }
 0x104   :  { %v223_v55 = vpop.f32.mrf.mxu0  ;;  %v296_v56 = vpop.f32.mrf.mxu1 }
 0x105   :  { %2921 = vst [vmem:[#allocation22_spill] sm:$0xff] %v2477_v54  ;;  %v2481_v58 = vadd.f32 %v223_v55, %v106_v53  ;;  %v2484_v59 = vadd.f32 %v296_v56, %v2465_v44 }
 0x106   :  { %v225_v60 = vpop.f32.mrf.mxu0  ;;  %v298_v61 = vpop.f32.mrf.mxu1 }
 0x107   :  { %v2487_v62 = vadd.f32 %v225_v60, %v2479_v57  ;;  %v2490_v63 = vadd.f32 %v298_v61, %v2467_v46 }
 0x108   :  { %v229_v1 = vpop.f32.mrf.mxu0  ;;  %v302_v2 = vpop.f32.mrf.mxu1 }
 0x109   :  { %v2492_v3 = vadd.f32 %v229_v1, %v106_v53  ;;  %v2495_v4 = vadd.f32 %v302_v2, %v2465_v44 }
 0x10a   :  { %v231_v5 = vpop.f32.mrf.mxu0  ;;  %v304_v6 = vpop.f32.mrf.mxu1 }
 0x10b   :  { %v2498_v7 = vadd.f32 %v231_v5, %v2479_v57  ;;  %v2501_v8 = vadd.f32 %v304_v6, %v2467_v46 }
 0x10c   :  { %v233_v9 = vpop.f32.mrf.mxu0  ;;  %v306_v10 = vpop.f32.mrf.mxu1 }
 0x10d   :  { %v2503_v11 = vadd.f32 %v233_v9, %v106_v53  ;;  %v2506_v12 = vadd.f32 %v306_v10, %v2465_v44 }
 0x10e   :  { %v235_v14 = vpop.f32.mrf.mxu0  ;;  %v308_v20 = vpop.f32.mrf.mxu1 }
 0x10f   :  { %v2509_v21 = vadd.f32 %v235_v14, %v2479_v57  ;;  %v2512_v26 = vadd.f32 %v308_v20, %v2467_v46 }
 0x110   :  { %v239_v31 = vpop.f32.mrf.mxu0  ;;  %v312_v32 = vpop.f32.mrf.mxu1 }
 0x111   :  { %v2514_v35 = vadd.f32 %v239_v31, %v106_v53  ;;  %v2517_v36 = vadd.f32 %v312_v32, %v2465_v44 }
 0x112   :  { %v241_v37 = vpop.f32.mrf.mxu0  ;;  %v314_v38 = vpop.f32.mrf.mxu1 }
 0x113   :  { %v2520_v39 = vadd.f32 %v241_v37, %v2479_v57  ;;  %v2523_v40 = vadd.f32 %v314_v38, %v2467_v46  ;;  %v220_v38 = vadd.f32 %v2469_v47, %v106_v53  ;;  %v222_v47 = vadd.f32 %v2474_v51, %v2479_v57 }
 0x114   :  { %v243_v41 = vpop.f32.mrf.mxu0  ;;  %v316_v42 = vpop.f32.mrf.mxu1 }
 0x115   :  { %v2525_v43 = vadd.f32 %v243_v41, %v106_v53  ;;  %v2528_v45 = vadd.f32 %v316_v42, %v2465_v44 }
 0x116   :  { %v245_v48 = vpop.f32.mrf.mxu0  ;;  %v318_v50 = vpop.f32.mrf.mxu1 }
 0x117   :  { %v2531_v52 = vadd.f32 %v245_v48, %v2479_v57  ;;  %v2534_v55 = vadd.f32 %v318_v50, %v2467_v46 }
 0x118   :  { %v249_v56 = vpop.f32.mrf.mxu0  ;;  %v322_v60 = vpop.f32.mrf.mxu1 }
 0x119   :  { %v2536_v61 = vadd.f32 %v249_v56, %v106_v53  ;;  %v2539_v1 = vadd.f32 %v322_v60, %v2465_v44 }
 0x11a   :  { %v251_v2 = vpop.f32.mrf.mxu0  ;;  %v324_v5 = vpop.f32.mrf.mxu1 }
 0x11b   :  { %v2542_v6 = vadd.f32 %v251_v2, %v2479_v57  ;;  %v2545_v9 = vadd.f32 %v324_v5, %v2467_v46 }
 0x11c   :  { %v253_v10 = vpop.f32.mrf.mxu0  ;;  %v326_v14 = vpop.f32.mrf.mxu1 }
 0x11d   :  { %v2547_v20 = vadd.f32 %v253_v10, %v106_v53  ;;  %v327_v31 = vadd.f32 %v326_v14, %v2465_v44 }
 0x11e   :  { %v255_v32 = vpop.f32.mrf.mxu0  ;;  %v328_v37 = vpop.f32.mrf.mxu1 }
 0x11f   :  { %v2552_v41 = vadd.f32 %v255_v32, %v2479_v57  ;;  %v329_v49 = vadd.f32 %v328_v37, %v2467_v46 }
 0x120   :  { %v459_v42 = vpop.f32.mrf.mxu0  ;;  %v567_v48 = vpop.f32.mrf.mxu1 }
 0x121   :  { %2922 = vst [vmem:[#allocation23_spill] sm:$0xff] %v2552_v41  ;;  %v466_v50 = vadd.f32 %v459_v42, %v220_v38  ;;  %v574_v56 = vadd.f32 %v567_v48, %v327_v31 }
 0x122   :  { %v461_v60 = vpop.f32.mrf.mxu0  ;;  %v569_v2 = vpop.f32.mrf.mxu1 }
 0x123   :  { %v1814_v5 = vmul.f32 -1.442695, %v466_v50  ;;  %v1824_v0 = vmul.f32 -1.442695, %v574_v56  ;;  %v467_v53 = vadd.f32 %v461_v60, %v222_v47  ;;  %v575_v42 = vadd.f32 %v569_v2, %v329_v49 }
 0x124   :  { %v463_v54 = vpop.f32.mrf.mxu0  ;;  %v571_v10 = vpop.f32.mrf.mxu1 }
 0x125   :  { %1941 = vpow2.f32 %v1814_v5  ;;  %v1815_v56 = vmul.f32 -1.442695, %v467_v53  ;;  %v1825_v46 = vmul.f32 -1.442695, %v575_v42 }
 0x126   :  { %1943 = vpow2.f32 %v1824_v0  ;;  %v464_v44 = vpop.f32.mrf.mxu0  ;;  %v572_v14 = vpop.f32.mrf.mxu1 }
 0x127   :  { %1945 = vtanh.f32 %v467_v53 }
 0x132   :  { %v1942_v32 = vpop.eup %1941 }
 0x133   :  { %v1944_v41 = vpop.eup %1943  ;;  %v471_v38 = vadd.f32 1.0, %v1942_v32 }
 0x134   :  { %v579_v31 = vadd.f32 1.0, %v1944_v41  ;;  %v1946_v54 = vpop.eup %1945 }
 0x135   :  { %1947 = vrcp.f32 %v471_v38 }
 0x136   :  { %1949 = vrcp.f32 %v579_v31 }
 0x137   :  { %1951 = vtanh.f32 %v575_v42 }
 0x138   :  { %1953 = vpow2.f32 %v1815_v56 }
 0x139   :  { %1955 = vpow2.f32 %v1825_v46 }
 0x142   :  { %v1948_v48 = vpop.eup %1947 }
 0x143   :  { %v482_v0 = vmul.f32 %v1948_v48, %v1946_v54  ;;  %v1950_v50 = vpop.eup %1949  ;;  %v481_v60 = vmul.f32 0.0, %v1948_v48 }
 0x144   :  { %v1952_v51 = vpop.eup %1951  ;;  %v589_v44 = vmul.f32 0.0, %v1950_v50 }
 0x145   :  { %484 = vrot.lane.b32.xlu0 %v482_v0, %s2308_s4  ;;  %v590_v57 = vmul.f32 %v1952_v51, %v1950_v50  ;;  %v1954_v37 = vpop.eup %1953  ;;  %v2923_v51 = vmov 0  }
 0x146   :  { %v478_v41 = vadd.f32 1.0, %v1954_v37  ;;  %v1956_v49 = vpop.eup %1955 }
 0x147   :  { %v586_v10 = vadd.f32 1.0, %v1956_v49 }
 0x148   :  { %1957 = vrcp.f32 %v478_v41 }
 0x149   :  { %592 = vrot.lane.b32.xlu0 %v590_v57, %s2308_s4 }
 0x155   :  { %v1958_v53 = vpop.eup %1957 }
 0x1b7   :  { %v485_v2 = vpop.permute.xlu0 %484 }
 0x1b8   :  { %v2559_v5 = vadd.f32 %v485_v2, %v481_v60 }
 0x1ba   :  { %1959 = vtanh.f32 %v2559_v5 }
 0x1bb   :  { %v593_v14 = vpop.permute.xlu0 %592  ;;  %1961 = vrcp.f32 %v586_v10 }
 0x1bc   :  { %v2562_v47 = vadd.f32 %v593_v14, %v589_v44 }
 0x1be   :  { %1963 = vtanh.f32 %v2562_v47 }
 0x1c7   :  { %v1960_v32 = vpop.eup %1959 }
 0x1c8   :  { %v2565_v38 = vmul.f32 %v1960_v32, %v1958_v53  ;;  %v1962_v31 = vpop.eup %1961 }
 0x1ca   :  { %v609_v42 = vpack.c.bf16 %v2565_v38, %v2565_v38 }
 0x1cb   :  { %v1964_v54 = vpop.eup %1963 }
 0x1cc   :  { %611 = vrot.lane.b32.xlu1 %v609_v42, %s2308_s4  ;;  %v597_v48 = vmul.f32 %v1964_v54, %v1962_v31 }
 0x1ce   :  { %v684_v0 = vpack.c.bf16 %v597_v48, %v597_v48  ;;  %605 = vst.msk [vmem:[#allocation3 + $0x38] sm:$0xff] %vm604_vm2, %v597_v48 }
 0x1d0   :  { %686 = vrot.lane.b32.xlu1 %v684_v0, %s2308_s4 }
 0x23e   :  { %v612_v50 = vpop.permute.xlu1 %611 }
 0x23f   :  { %1826 = vmatmul.mubr.msk.bf16.vlgmr.msra.gmra.mxu0 %vm421_vm3, %v612_v50 }
 0x240   :  { %783 = vmatpush1.bf16.msra.mxu0 %v2380_v16  ;;  %806 = vmatprep.mubr.bf16.mxu0 %v2923_v51 }
 0x241   :  { %784 = vmatprep.subr.bf16.mxu0 %v2386_v18 }
 0x242   :  { %v687_v57 = vpop.permute.xlu1 %686 }
 0x243   :  { %1829 = vmatmul.mubr.msk.bf16.vlgmr.msra.gmra.mxu1 %vm421_vm3, %v687_v57 }
 0x244   :  { %785 = vmatpush1.bf16.msra.mxu0 %v2392_v22  ;;  %858 = vmatpush1.bf16.msra.mxu1 %v2384_v17 }
 0x245   :  { %786 = vmatprep.subr.bf16.mxu0 %v2400_v24  ;;  %859 = vmatprep.subr.bf16.mxu1 %v2388_v19 }
 0x246   :  { %881 = vmatprep.mubr.bf16.mxu1 %v2923_v51 }
 0x248   :  { %787 = vmatpush1.bf16.msra.mxu0 %v2409_v27  ;;  %860 = vmatpush1.bf16.msra.mxu1 %v2396_v23 }
 0x249   :  { %788 = vmatprep.subr.bf16.mxu0 %v2414_v29  ;;  %861 = vmatprep.subr.bf16.mxu1 %v2404_v25 }
 0x24c   :  { %789 = vmatpush1.bf16.msra.mxu0 %v2424_v33  ;;  %862 = vmatpush1.bf16.msra.mxu1 %v2411_v28 }
 0x24d   :  { %863 = vmatprep.subr.bf16.mxu1 %v2416_v30  ;;  %940 = vmatprep.subr.bf16.mxu0 %v2376_v13 }
 0x250   :  { %864 = vmatpush1.bf16.msra.mxu1 %v2426_v34 }
 0x251   :  { %1015 = vmatprep.subr.bf16.mxu1 %v2378_v15 }
 0x2ff   :  { %v650_v56 = vpop.f32.mrf.mxu0 }
 0x300   :  { %v657_v46 = vadd.f32 %v650_v56, %v2481_v58 }
 0x301   :  { %v652_v37 = vpop.f32.mrf.mxu0 }
 0x302   :  { %v1827_v41 = vmul.f32 -1.442695, %v657_v46  ;;  %v658_v31 = vadd.f32 %v652_v37, %v2487_v62 }
 0x303   :  { %v654_v49 = vpop.f32.mrf.mxu0  ;;  %v725_v60 = vpop.f32.mrf.mxu1 }
 0x304   :  { %1965 = vpow2.f32 %v1827_v41  ;;  %v732_v2 = vadd.f32 %v725_v60, %v2539_v1  ;;  %v1828_v62 = vmul.f32 -1.442695, %v658_v31 }
 0x305   :  { %v655_v10 = vpop.f32.mrf.mxu0  ;;  %v727_v44 = vpop.f32.mrf.mxu1 }
 0x306   :  { %v1830_v14 = vmul.f32 -1.442695, %v732_v2  ;;  %v733_v58 = vadd.f32 %v727_v44, %v2545_v9 }
 0x307   :  { %v729_v53 = vpop.f32.mrf.mxu1 }
 0x308   :  { %1967 = vpow2.f32 %v1830_v14  ;;  %v1831_v37 = vmul.f32 -1.442695, %v733_v58 }
 0x309   :  { %v730_v32 = vpop.f32.mrf.mxu1  ;;  %1969 = vtanh.f32 %v658_v31 }
 0x311   :  { %v1966_v42 = vpop.eup %1965 }
 0x312   :  { %v662_v54 = vadd.f32 1.0, %v1966_v42 }
 0x314   :  { %1971 = vrcp.f32 %v662_v54 }
 0x315   :  { %v1968_v48 = vpop.eup %1967  ;;  %1973 = vtanh.f32 %v733_v58 }
 0x316   :  { %v737_v0 = vadd.f32 1.0, %v1968_v48  ;;  %v1970_v50 = vpop.eup %1969 }
 0x318   :  { %1975 = vrcp.f32 %v737_v0 }
 0x319   :  { %1977 = vpow2.f32 %v1828_v62 }
 0x31a   :  { %1979 = vpow2.f32 %v1831_v37 }
 0x321   :  { %v1972_v1 = vpop.eup %1971 }
 0x322   :  { %v673_v57 = vmul.f32 %v1972_v1, %v1970_v50  ;;  %v1974_v56 = vpop.eup %1973  ;;  %v672_v2 = vmul.f32 %v1972_v1, %v2559_v5 }
 0x324   :  { %675 = vrot.lane.b32.xlu0 %v673_v57, %s2308_s4 }
 0x325   :  { %v1976_v46 = vpop.eup %1975 }
 0x326   :  { %v748_v41 = vmul.f32 %v1976_v46, %v1974_v56  ;;  %v1978_v9 = vpop.eup %1977  ;;  %v747_v53 = vmul.f32 %v1976_v46, %v2562_v47 }
 0x327   :  { %v669_v49 = vadd.f32 1.0, %v1978_v9  ;;  %v1980_v60 = vpop.eup %1979 }
 0x328   :  { %750 = vrot.lane.b32.xlu1 %v748_v41, %s2308_s4  ;;  %v744_v14 = vadd.f32 1.0, %v1980_v60 }
 0x329   :  { %1981 = vrcp.f32 %v669_v49 }
 0x336   :  { %v1982_v31 = vpop.eup %1981 }
 0x396   :  { %v676_v10 = vpop.permute.xlu0 %675 }
 0x397   :  { %v2599_v44 = vadd.f32 %v676_v10, %v672_v2 }
 0x399   :  { %1983 = vtanh.f32 %v2599_v44 }
 0x39a   :  { %v751_v32 = vpop.permute.xlu1 %750  ;;  %1985 = vrcp.f32 %v744_v14 }
 0x39b   :  { %v2603_v42 = vadd.f32 %v751_v32, %v747_v53 }
 0x39d   :  { %1987 = vtanh.f32 %v2603_v42 }
 0x3a6   :  { %v1984_v54 = vpop.eup %1983 }
 0x3a7   :  { %v2606_v58 = vmul.f32 %v1984_v54, %v1982_v31  ;;  %v1986_v5 = vpop.eup %1985 }
 0x3a9   :  { %v767_v48 = vpack.c.bf16 %v2606_v58, %v2606_v58 }
 0x3aa   :  { %v1988_v0 = vpop.eup %1987 }
 0x3ab   :  { %769 = vrot.lane.b32.xlu0 %v767_v48, %s2308_s4  ;;  %v755_v50 = vmul.f32 %v1988_v0, %v1986_v5 }
 0x3ad   :  { %v842_v1 = vpack.c.bf16 %v755_v50, %v755_v50  ;;  %763 = vst.msk [vmem:[#allocation3 + $0x30] sm:$0xff] %vm604_vm2, %v755_v50 }
 0x3af   :  { %844 = vrot.lane.b32.xlu1 %v842_v1, %s2308_s4 }
 0x41d   :  { %v770_v47 = vpop.permute.xlu0 %769 }
 0x41e   :  { %1832 = vmatmul.mubr.msk.bf16.vlgmr.msra.gmra.mxu0 %vm421_vm3, %v770_v47 }
 0x41f   :  { %941 = vmatpush1.bf16.msra.mxu0 %v2380_v16  ;;  %964 = vmatprep.mubr.bf16.mxu0 %v2923_v51 }
 0x420   :  { %942 = vmatprep.subr.bf16.mxu0 %v2386_v18 }
 0x421   :  { %v845_v57 = vpop.permute.xlu1 %844 }
 0x422   :  { %1835 = vmatmul.mubr.msk.bf16.vlgmr.msra.gmra.mxu1 %vm421_vm3, %v845_v57 }
 0x423   :  { %943 = vmatpush1.bf16.msra.mxu0 %v2392_v22  ;;  %1016 = vmatpush1.bf16.msra.mxu1 %v2384_v17 }
 0x424   :  { %944 = vmatprep.subr.bf16.mxu0 %v2400_v24  ;;  %1017 = vmatprep.subr.bf16.mxu1 %v2388_v19 }
 0x425   :  { %1039 = vmatprep.mubr.bf16.mxu1 %v2923_v51 }
 0x427   :  { %945 = vmatpush1.bf16.msra.mxu0 %v2409_v27  ;;  %1018 = vmatpush1.bf16.msra.mxu1 %v2396_v23 }
 0x428   :  { %946 = vmatprep.subr.bf16.mxu0 %v2414_v29  ;;  %1019 = vmatprep.subr.bf16.mxu1 %v2404_v25 }
 0x42b   :  { %947 = vmatpush1.bf16.msra.mxu0 %v2424_v33  ;;  %1020 = vmatpush1.bf16.msra.mxu1 %v2411_v28 }
 0x42c   :  { %1021 = vmatprep.subr.bf16.mxu1 %v2416_v30  ;;  %1097 = vmatprep.subr.bf16.mxu0 %v2376_v13 }
 0x42f   :  { %1022 = vmatpush1.bf16.msra.mxu1 %v2426_v34 }
 0x430   :  { %1171 = vmatprep.subr.bf16.mxu1 %v2378_v15 }
 0x4de   :  { %v808_v56 = vpop.f32.mrf.mxu0 }
 0x4df   :  { %v815_v46 = vadd.f32 %v808_v56, %v2492_v3 }
 0x4e0   :  { %v810_v41 = vpop.f32.mrf.mxu0 }
 0x4e1   :  { %v1833_v62 = vmul.f32 -1.442695, %v815_v46  ;;  %v816_v32 = vadd.f32 %v810_v41, %v2498_v7 }
 0x4e2   :  { %v812_v37 = vpop.f32.mrf.mxu0  ;;  %v883_v9 = vpop.f32.mrf.mxu1 }
 0x4e3   :  { %1989 = vpow2.f32 %v1833_v62  ;;  %v890_v49 = vadd.f32 %v883_v9, %v2528_v45  ;;  %v1834_v7 = vmul.f32 -1.442695, %v816_v32 }
 0x4e4   :  { %v813_v60 = vpop.f32.mrf.mxu0  ;;  %v885_v2 = vpop.f32.mrf.mxu1 }
 0x4e5   :  { %v1836_v10 = vmul.f32 -1.442695, %v890_v49  ;;  %v891_v3 = vadd.f32 %v885_v2, %v2534_v55 }
 0x4e6   :  { %v887_v14 = vpop.f32.mrf.mxu1 }
 0x4e7   :  { %1991 = vpow2.f32 %v1836_v10  ;;  %v1837_v56 = vmul.f32 -1.442695, %v891_v3 }
 0x4e8   :  { %v888_v53 = vpop.f32.mrf.mxu1  ;;  %1993 = vtanh.f32 %v816_v32 }
 0x4f0   :  { %v1990_v31 = vpop.eup %1989 }
 0x4f1   :  { %v820_v54 = vadd.f32 1.0, %v1990_v31 }
 0x4f3   :  { %1995 = vrcp.f32 %v820_v54 }
 0x4f4   :  { %v1992_v5 = vpop.eup %1991  ;;  %1997 = vtanh.f32 %v891_v3 }
 0x4f5   :  { %v895_v48 = vadd.f32 1.0, %v1992_v5  ;;  %v1994_v0 = vpop.eup %1993 }
 0x4f7   :  { %1999 = vrcp.f32 %v895_v48 }
 0x4f8   :  { %2001 = vpow2.f32 %v1834_v7 }
 0x4f9   :  { %2003 = vpow2.f32 %v1837_v56 }
 0x500   :  { %v1996_v45 = vpop.eup %1995 }
 0x501   :  { %v831_v50 = vmul.f32 %v1996_v45, %v1994_v0  ;;  %v1998_v1 = vpop.eup %1997  ;;  %v830_v62 = vmul.f32 %v1996_v45, %v2599_v44 }
 0x503   :  { %833 = vrot.lane.b32.xlu0 %v831_v50, %s2308_s4 }
 0x504   :  { %v2000_v47 = vpop.eup %1999 }
 0x505   :  { %v906_v57 = vmul.f32 %v2000_v47, %v1998_v1  ;;  %v2002_v55 = vpop.eup %2001  ;;  %v905_v60 = vmul.f32 %v2000_v47, %v2603_v42 }
 0x506   :  { %v827_v46 = vadd.f32 1.0, %v2002_v55  ;;  %v2004_v41 = vpop.eup %2003 }
 0x507   :  { %908 = vrot.lane.b32.xlu1 %v906_v57, %s2308_s4  ;;  %v902_v49 = vadd.f32 1.0, %v2004_v41 }
 0x508   :  { %2005 = vrcp.f32 %v827_v46 }
 0x515   :  { %v2006_v14 = vpop.eup %2005 }
 0x575   :  { %v834_v37 = vpop.permute.xlu0 %833 }
 0x576   :  { %v2640_v9 = vadd.f32 %v834_v37, %v830_v62 }
 0x578   :  { %2007 = vtanh.f32 %v2640_v9 }
 0x579   :  { %v909_v2 = vpop.permute.xlu1 %908  ;;  %2009 = vrcp.f32 %v902_v49 }
 0x57a   :  { %v2644_v10 = vadd.f32 %v909_v2, %v905_v60 }
 0x57c   :  { %2011 = vtanh.f32 %v2644_v10 }
 0x585   :  { %v2008_v53 = vpop.eup %2007 }
 0x586   :  { %v2647_v32 = vmul.f32 %v2008_v53, %v2006_v14  ;;  %v2010_v44 = vpop.eup %2009 }
 0x588   :  { %v925_v31 = vpack.c.bf16 %v2647_v32, %v2647_v32 }
 0x589   :  { %v2012_v54 = vpop.eup %2011 }
 0x58a   :  { %927 = vrot.lane.b32.xlu0 %v925_v31, %s2308_s4  ;;  %v913_v3 = vmul.f32 %v2012_v54, %v2010_v44 }
 0x58c   :  { %v1000_v5 = vpack.c.bf16 %v913_v3, %v913_v3  ;;  %921 = vst.msk [vmem:[#allocation3 + $0x28] sm:$0xff] %vm604_vm2, %v913_v3 }
 0x58e   :  { %1002 = vrot.lane.b32.xlu1 %v1000_v5, %s2308_s4 }
 0x5fc   :  { %v928_v42 = vpop.permute.xlu0 %927 }
 0x5fd   :  { %1838 = vmatmul.mubr.msk.bf16.vlgmr.msra.gmra.mxu0 %vm421_vm3, %v928_v42 }
 0x5fe   :  { %1098 = vmatpush1.bf16.msra.mxu0 %v2380_v16  ;;  %1121 = vmatprep.mubr.bf16.mxu0 %v2923_v51 }
 0x5ff   :  { %1099 = vmatprep.subr.bf16.mxu0 %v2386_v18 }
 0x600   :  { %v1003_v48 = vpop.permute.xlu1 %1002 }
 0x601   :  { %1841 = vmatmul.mubr.msk.bf16.vlgmr.msra.gmra.mxu1 %vm421_vm3, %v1003_v48 }
 0x602   :  { %1100 = vmatpush1.bf16.msra.mxu0 %v2392_v22  ;;  %1172 = vmatpush1.bf16.msra.mxu1 %v2384_v17 }
 0x603   :  { %1101 = vmatprep.subr.bf16.mxu0 %v2400_v24  ;;  %1173 = vmatprep.subr.bf16.mxu1 %v2388_v19 }
 0x604   :  { %1195 = vmatprep.mubr.bf16.mxu1 %v2923_v51 }
 0x606   :  { %1102 = vmatpush1.bf16.msra.mxu0 %v2409_v27  ;;  %1174 = vmatpush1.bf16.msra.mxu1 %v2396_v23 }
 0x607   :  { %1103 = vmatprep.subr.bf16.mxu0 %v2414_v29  ;;  %1175 = vmatprep.subr.bf16.mxu1 %v2404_v25 }
 0x60a   :  { %1104 = vmatpush1.bf16.msra.mxu0 %v2424_v33  ;;  %1176 = vmatpush1.bf16.msra.mxu1 %v2411_v28 }
 0x60b   :  { %1177 = vmatprep.subr.bf16.mxu1 %v2416_v30  ;;  %1251 = vmatprep.subr.bf16.mxu0 %v2376_v13 }
 0x60e   :  { %1178 = vmatpush1.bf16.msra.mxu1 %v2426_v34 }
 0x60f   :  { %1325 = vmatprep.subr.bf16.mxu1 %v2378_v15 }
 0x6bd   :  { %v966_v0 = vpop.f32.mrf.mxu0 }
 0x6be   :  { %v973_v45 = vadd.f32 %v966_v0, %v2503_v11 }
 0x6bf   :  { %v968_v50 = vpop.f32.mrf.mxu0 }
 0x6c0   :  { %v1839_v1 = vmul.f32 -1.442695, %v973_v45  ;;  %v974_v37 = vadd.f32 %v968_v50, %v2509_v21 }
 0x6c1   :  { %v970_v47 = vpop.f32.mrf.mxu0  ;;  %v1041_v57 = vpop.f32.mrf.mxu1 }
 0x6c2   :  { %2013 = vpow2.f32 %v1839_v1  ;;  %v1048_v7 = vadd.f32 %v1041_v57, %v2517_v36  ;;  %v1840_v21 = vmul.f32 -1.442695, %v974_v37 }
 0x6c3   :  { %v971_v56 = vpop.f32.mrf.mxu0  ;;  %v1043_v55 = vpop.f32.mrf.mxu1 }
 0x6c4   :  { %v1842_v46 = vmul.f32 -1.442695, %v1048_v7  ;;  %v1049_v11 = vadd.f32 %v1043_v55, %v2523_v40 }
 0x6c5   :  { %v1045_v41 = vpop.f32.mrf.mxu1 }
 0x6c6   :  { %2015 = vpow2.f32 %v1842_v46  ;;  %v1843_v5 = vmul.f32 -1.442695, %v1049_v11 }
 0x6c7   :  { %v1046_v62 = vpop.f32.mrf.mxu1  ;;  %2017 = vtanh.f32 %v974_v37 }
 0x6cf   :  { %v2014_v49 = vpop.eup %2013 }
 0x6d0   :  { %v978_v60 = vadd.f32 1.0, %v2014_v49 }
 0x6d2   :  { %2019 = vrcp.f32 %v978_v60 }
 0x6d3   :  { %v2016_v2 = vpop.eup %2015  ;;  %2021 = vtanh.f32 %v1049_v11 }
 0x6d4   :  { %v1053_v14 = vadd.f32 1.0, %v2016_v2  ;;  %v2018_v53 = vpop.eup %2017 }
 0x6d6   :  { %2023 = vrcp.f32 %v1053_v14 }
 0x6d7   :  { %2025 = vpow2.f32 %v1840_v21 }
 0x6d8   :  { %2027 = vpow2.f32 %v1843_v5 }
 0x6df   :  { %v2020_v36 = vpop.eup %2019 }
 0x6e0   :  { %v989_v44 = vmul.f32 %v2020_v36, %v2018_v53  ;;  %v2022_v31 = vpop.eup %2021  ;;  %v988_v0 = vmul.f32 %v2020_v36, %v2640_v9 }
 0x6e2   :  { %991 = vrot.lane.b32.xlu0 %v989_v44, %s2308_s4 }
 0x6e3   :  { %v2024_v54 = vpop.eup %2023 }
 0x6e4   :  { %v1064_v3 = vmul.f32 %v2024_v54, %v2022_v31  ;;  %v2026_v40 = vpop.eup %2025  ;;  %v1063_v47 = vmul.f32 %v2024_v54, %v2644_v10 }
 0x6e5   :  { %v985_v42 = vadd.f32 1.0, %v2026_v40  ;;  %v2028_v48 = vpop.eup %2027 }
 0x6e6   :  { %1066 = vrot.lane.b32.xlu1 %v1064_v3, %s2308_s4  ;;  %v1060_v1 = vadd.f32 1.0, %v2028_v48 }
 0x6e7   :  { %2029 = vrcp.f32 %v985_v42 }
 0x6f4   :  { %v2030_v56 = vpop.eup %2029 }
 0x754   :  { %v992_v45 = vpop.permute.xlu0 %991 }
 0x755   :  { %v2681_v50 = vadd.f32 %v992_v45, %v988_v0 }
 0x757   :  { %2031 = vtanh.f32 %v2681_v50 }
 0x758   :  { %v1067_v57 = vpop.permute.xlu1 %1066  ;;  %2033 = vrcp.f32 %v1060_v1 }
 0x759   :  { %v2685_v7 = vadd.f32 %v1067_v57, %v1063_v47 }
 0x75b   :  { %2035 = vtanh.f32 %v2685_v7 }
 0x764   :  { %v2032_v55 = vpop.eup %2031 }
 0x765   :  { %v2688_v46 = vmul.f32 %v2032_v55, %v2030_v56  ;;  %v2034_v9 = vpop.eup %2033 }
 0x767   :  { %v1082_v41 = vpack.c.bf16 %v2688_v46, %v2688_v46 }
 0x768   :  { %v2036_v62 = vpop.eup %2035 }
 0x769   :  { %1084 = vrot.lane.b32.xlu0 %v1082_v41, %s2308_s4  ;;  %v1071_v37 = vmul.f32 %v2036_v62, %v2034_v9  ;;  %v2740_v62 = vld [vmem:[#allocation9 + $0x30] ss:$8 sps:$4 sm:$0xff]  }
 0x76b   :  { %v1156_v49 = vpack.c.bf16 %v1071_v37, %v1071_v37  ;;  %1079 = vst.msk [vmem:[#allocation3 + $0x20] sm:$0xff] %vm604_vm2, %v1071_v37  ;;  %v2744_v37 = vld [vmem:[#allocation9 + $0x24] ss:$8 sps:$4 sm:$0xff]  }
 0x76d   :  { %1158 = vrot.lane.b32.xlu1 %v1156_v49, %s2308_s4 }
 0x7db   :  { %v1085_v10 = vpop.permute.xlu0 %1084 }
 0x7dc   :  { %1844 = vmatmul.mubr.msk.bf16.vlgmr.msra.gmra.mxu0 %vm421_vm3, %v1085_v10  ;;  %v2748_v10 = vld [vmem:[#allocation9 + $0x20] ss:$8 sps:$4 sm:$0xff]  }
 0x7dd   :  { %1252 = vmatpush1.bf16.msra.mxu0 %v2380_v16  ;;  %1275 = vmatprep.mubr.bf16.mxu0 %v2923_v51 }
 0x7de   :  { %1253 = vmatprep.subr.bf16.mxu0 %v2386_v18 }
 0x7df   :  { %v1159_v60 = vpop.permute.xlu1 %1158 }
 0x7e0   :  { %1847 = vmatmul.mubr.msk.bf16.vlgmr.msra.gmra.mxu1 %vm421_vm3, %v1159_v60  ;;  %v2751_v60 = vld [vmem:[#allocation10 + $0x30] ss:$8 sps:$4 sm:$0xff]  }
 0x7e1   :  { %1254 = vmatpush1.bf16.msra.mxu0 %v2392_v22  ;;  %1326 = vmatpush1.bf16.msra.mxu1 %v2384_v17 }
 0x7e2   :  { %1255 = vmatprep.subr.bf16.mxu0 %v2400_v24  ;;  %1327 = vmatprep.subr.bf16.mxu1 %v2388_v19 }
 0x7e3   :  { %1349 = vmatprep.mubr.bf16.mxu1 %v2923_v51 }
 0x7e5   :  { %1256 = vmatpush1.bf16.msra.mxu0 %v2409_v27  ;;  %1328 = vmatpush1.bf16.msra.mxu1 %v2396_v23 }
 0x7e6   :  { %1257 = vmatprep.subr.bf16.mxu0 %v2414_v29  ;;  %1329 = vmatprep.subr.bf16.mxu1 %v2404_v25 }
 0x7e9   :  { %1258 = vmatpush1.bf16.msra.mxu0 %v2424_v33  ;;  %1330 = vmatpush1.bf16.msra.mxu1 %v2411_v28 }
 0x7ea   :  { %1331 = vmatprep.subr.bf16.mxu1 %v2416_v30  ;;  %1405 = vmatprep.subr.bf16.mxu0 %v2376_v13 }
 0x7ed   :  { %1332 = vmatpush1.bf16.msra.mxu1 %v2426_v34 }
 0x7ee   :  { %1479 = vmatprep.subr.bf16.mxu1 %v2378_v15 }
 0x89c   :  { %v1123_v16 = vpop.f32.mrf.mxu0 }
 0x89d   :  { %v1130_v17 = vadd.f32 %v1123_v16, %v2514_v35  ;;  %v2754_v16 = vld [vmem:[#allocation9 + $0x14] ss:$8 sps:$4 sm:$0xff]  }
 0x89e   :  { %v1125_v18 = vpop.f32.mrf.mxu0 }
 0x89f   :  { %v1845_v19 = vmul.f32 -1.442695, %v1130_v17  ;;  %v1131_v30 = vadd.f32 %v1125_v18, %v2520_v39  ;;  %v2757_v17 = vld [vmem:[#allocation10 + $0x24] ss:$8 sps:$4 sm:$0xff]   ;;  %v2761_v18 = vld [vmem:[#allocation9 + $0x10] ss:$8 sps:$4 sm:$0xff]  }
 0x8a0   :  { %v1127_v22 = vpop.f32.mrf.mxu0  ;;  %v1197_v23 = vpop.f32.mrf.mxu1 }
 0x8a1   :  { %2037 = vpow2.f32 %v1845_v19  ;;  %v1204_v24 = vadd.f32 %v1197_v23, %v2506_v12  ;;  %v1846_v39 = vmul.f32 -1.442695, %v1131_v30  ;;  %v2764_v19 = vld [vmem:[#allocation10 + $0x20] ss:$8 sps:$4 sm:$0xff]   ;;  %v2767_v22 = vld [vmem:[#allocation9 + $0x4] ss:$8 sps:$4 sm:$0xff]  }
 0x8a2   :  { %v1128_v25 = vpop.f32.mrf.mxu0  ;;  %v1199_v27 = vpop.f32.mrf.mxu1  ;;  %v2770_v23 = vld [vmem:[#allocation10 + $0x14] ss:$8 sps:$4 sm:$0xff]  }
 0x8a3   :  { %v1848_v28 = vmul.f32 -1.442695, %v1204_v24  ;;  %v1205_v34 = vadd.f32 %v1199_v27, %v2512_v26  ;;  %v2773_v24 = vld [vmem:[#allocation9] ss:$8 sps:$4 sm:$0xff]   ;;  %v2776_v25 = vld [vmem:[#allocation10 + $0x10] ss:$8 sps:$4 sm:$0xff]  }
 0x8a4   :  { %v1201_v29 = vpop.f32.mrf.mxu1  ;;  %v2779_v27 = vld [vmem:[#allocation10 + $0x4] ss:$8 sps:$4 sm:$0xff]  }
 0x8a5   :  { %2039 = vpow2.f32 %v1848_v28  ;;  %v1849_v31 = vmul.f32 -1.442695, %v1205_v34  ;;  %v2146_v28 = vld [vmem:[#allocation9 + $0x34] ss:$8 sps:$4 sm:$0xff]   ;;  %v2782_v29 = vld [vmem:[#allocation10] ss:$8 sps:$4 sm:$0xff]  }
 0x8a6   :  { %v1202_v13 = vpop.f32.mrf.mxu1  ;;  %2041 = vtanh.f32 %v1131_v30 }
 0x8a7   :  { %v2148_v13 = vld [vmem:[#allocation10 + $0x34] ss:$8 sps:$4 sm:$0xff]  }
 0x8ae   :  { %v2038_v33 = vpop.eup %2037 }
 0x8af   :  { %v1135_v15 = vadd.f32 1.0, %v2038_v33 }
 0x8b1   :  { %2043 = vrcp.f32 %v1135_v15 }
 0x8b2   :  { %v2040_v35 = vpop.eup %2039  ;;  %2045 = vtanh.f32 %v1205_v34 }
 0x8b3   :  { %v1209_v11 = vadd.f32 1.0, %v2040_v35  ;;  %v2042_v2 = vpop.eup %2041 }
 0x8b5   :  { %2047 = vrcp.f32 %v1209_v11 }
 0x8b6   :  { %2049 = vpow2.f32 %v1846_v39 }
 0x8b7   :  { %2051 = vpow2.f32 %v1849_v31 }
 0x8be   :  { %v2044_v12 = vpop.eup %2043 }
 0x8bf   :  { %v1146_v14 = vmul.f32 %v2044_v12, %v2042_v2  ;;  %v2046_v53 = vpop.eup %2045  ;;  %v1145_v21 = vmul.f32 %v2044_v12, %v2681_v50 }
 0x8c1   :  { %1148 = vrot.lane.b32.xlu0 %v1146_v14, %s2308_s4 }
 0x8c2   :  { %v2048_v36 = vpop.eup %2047 }
 0x8c3   :  { %v1220_v44 = vmul.f32 %v2048_v36, %v2046_v53  ;;  %v2050_v26 = vpop.eup %2049  ;;  %v1219_v48 = vmul.f32 %v2048_v36, %v2685_v7 }
 0x8c4   :  { %v1142_v54 = vadd.f32 1.0, %v2050_v26  ;;  %v2052_v3 = vpop.eup %2051 }
 0x8c5   :  { %1222 = vrot.lane.b32.xlu1 %v1220_v44, %s2308_s4  ;;  %v1216_v42 = vadd.f32 1.0, %v2052_v3 }
 0x8c6   :  { %2053 = vrcp.f32 %v1142_v54 }
 0x8d3   :  { %v2054_v1 = vpop.eup %2053 }
 0x933   :  { %v1149_v5 = vpop.permute.xlu0 %1148 }
 0x934   :  { %v2722_v40 = vadd.f32 %v1149_v5, %v1145_v21 }
 0x936   :  { %2055 = vtanh.f32 %v2722_v40 }
 0x937   :  { %v1223_v0 = vpop.permute.xlu1 %1222  ;;  %2057 = vrcp.f32 %v1216_v42 }
 0x938   :  { %v2726_v45 = vadd.f32 %v1223_v0, %v1219_v48 }
 0x93a   :  { %2059 = vtanh.f32 %v2726_v45 }
 0x943   :  { %v2056_v47 = vpop.eup %2055 }
 0x944   :  { %v2729_v57 = vmul.f32 %v2056_v47, %v2054_v1  ;;  %v2058_v50 = vpop.eup %2057 }
 0x946   :  { %v1236_v56 = vpack.c.bf16 %v2729_v57, %v2729_v57 }
 0x947   :  { %v2060_v55 = vpop.eup %2059 }
 0x948   :  { %1238 = vrot.lane.b32.xlu0 %v1236_v56, %s2308_s4  ;;  %v2734_v9 = vmul.f32 %v2060_v55, %v2058_v50 }
 0x94a   :  { %v1310_v7 = vpack.c.bf16 %v2734_v9, %v2734_v9 }
 0x94c   :  { %1312 = vrot.lane.b32.xlu1 %v1310_v7, %s2308_s4 }
 0x9ba   :  { %v1239_v41 = vpop.permute.xlu0 %1238 }
 0x9bb   :  { %1850 = vmatmul.mubr.msk.bf16.vlgmr.msra.gmra.mxu0 %vm421_vm3, %v1239_v41 }
 0x9bc   :  { %1406 = vmatpush1.bf16.msra.mxu0 %v2740_v62  ;;  %1429 = vmatprep.mubr.bf16.mxu0 %v2923_v51 }
 0x9bd   :  { %1407 = vmatprep.subr.bf16.mxu0 %v2744_v37 }
 0x9be   :  { %v1313_v49 = vpop.permute.xlu1 %1312 }
 0x9bf   :  { %1853 = vmatmul.mubr.msk.bf16.vlgmr.msra.gmra.mxu1 %vm421_vm3, %v1313_v49 }
 0x9c0   :  { %1408 = vmatpush1.bf16.msra.mxu0 %v2748_v10  ;;  %1480 = vmatpush1.bf16.msra.mxu1 %v2751_v60 }
 0x9c1   :  { %1409 = vmatprep.subr.bf16.mxu0 %v2754_v16  ;;  %1481 = vmatprep.subr.bf16.mxu1 %v2757_v17 }
 0x9c2   :  { %1503 = vmatprep.mubr.bf16.mxu1 %v2923_v51 }
 0x9c4   :  { %1410 = vmatpush1.bf16.msra.mxu0 %v2761_v18  ;;  %1482 = vmatpush1.bf16.msra.mxu1 %v2764_v19 }
 0x9c5   :  { %1411 = vmatprep.subr.bf16.mxu0 %v2767_v22  ;;  %1483 = vmatprep.subr.bf16.mxu1 %v2770_v23 }
 0x9c8   :  { %1412 = vmatpush1.bf16.msra.mxu0 %v2773_v24  ;;  %1484 = vmatpush1.bf16.msra.mxu1 %v2776_v25 }
 0x9c9   :  { %1485 = vmatprep.subr.bf16.mxu1 %v2779_v27  ;;  %1559 = vmatprep.subr.bf16.mxu0 %v2146_v28 }
 0x9cc   :  { %1486 = vmatpush1.bf16.msra.mxu1 %v2782_v29 }
 0x9cd   :  { %1633 = vmatprep.subr.bf16.mxu1 %v2148_v13 }
 0xa7b   :  { %v1277_v30 = vpop.f32.mrf.mxu0 }
 0xa7c   :  { %v1284_v33 = vadd.f32 %v1277_v30, %v2525_v43 }
 0xa7d   :  { %v1279_v15 = vpop.f32.mrf.mxu0 }
 0xa7e   :  { %v1851_v34 = vmul.f32 -1.442695, %v1284_v33  ;;  %v1285_v39 = vadd.f32 %v1279_v15, %v2531_v52 }
 0xa7f   :  { %v1281_v35 = vpop.f32.mrf.mxu0  ;;  %v1351_v11 = vpop.f32.mrf.mxu1 }
 0xa80   :  { %2061 = vpow2.f32 %v1851_v34  ;;  %v1358_v2 = vadd.f32 %v1351_v11, %v2495_v4  ;;  %v1852_v52 = vmul.f32 -1.442695, %v1285_v39 }
 0xa81   :  { %v1282_v12 = vpop.f32.mrf.mxu0  ;;  %v1353_v14 = vpop.f32.mrf.mxu1 }
 0xa82   :  { %v1854_v53 = vmul.f32 -1.442695, %v1358_v2  ;;  %v1359_v43 = vadd.f32 %v1353_v14, %v2501_v8 }
 0xa83   :  { %v1355_v36 = vpop.f32.mrf.mxu1 }
 0xa84   :  { %2063 = vpow2.f32 %v1854_v53  ;;  %v1855_v1 = vmul.f32 -1.442695, %v1359_v43 }
 0xa85   :  { %v1356_v44 = vpop.f32.mrf.mxu1  ;;  %2065 = vtanh.f32 %v1285_v39 }
 0xa8d   :  { %v2062_v31 = vpop.eup %2061 }
 0xa8e   :  { %v1289_v26 = vadd.f32 1.0, %v2062_v31 }
 0xa90   :  { %2067 = vrcp.f32 %v1289_v26 }
 0xa91   :  { %v2064_v54 = vpop.eup %2063  ;;  %2069 = vtanh.f32 %v1359_v43 }
 0xa92   :  { %v1363_v3 = vadd.f32 1.0, %v2064_v54  ;;  %v2066_v21 = vpop.eup %2065 }
 0xa94   :  { %2071 = vrcp.f32 %v1363_v3 }
 0xa95   :  { %2073 = vpow2.f32 %v1852_v52 }
 0xa96   :  { %2075 = vpow2.f32 %v1855_v1 }
 0xa9d   :  { %v2068_v4 = vpop.eup %2067 }
 0xa9e   :  { %v1300_v5 = vmul.f32 %v2068_v4, %v2066_v21  ;;  %v2070_v42 = vpop.eup %2069  ;;  %v1299_v56 = vmul.f32 %v2068_v4, %v2722_v40 }
 0xaa0   :  { %1302 = vrot.lane.b32.xlu0 %v1300_v5, %s2308_s4 }
 0xaa1   :  { %v2072_v48 = vpop.eup %2071 }
 0xaa2   :  { %v1374_v0 = vmul.f32 %v2072_v48, %v2070_v42  ;;  %v2074_v8 = vpop.eup %2073  ;;  %v1373_v49 = vmul.f32 %v2072_v48, %v2726_v45 }
 0xaa3   :  { %v1296_v47 = vadd.f32 1.0, %v2074_v8  ;;  %v2076_v50 = vpop.eup %2075 }
 0xaa4   :  { %1376 = vrot.lane.b32.xlu1 %v1374_v0, %s2308_s4  ;;  %v1370_v41 = vadd.f32 1.0, %v2076_v50 }
 0xaa5   :  { %2077 = vrcp.f32 %v1296_v47 }
 0xab2   :  { %v2078_v30 = vpop.eup %2077 }
 0xb12   :  { %v1303_v55 = vpop.permute.xlu0 %1302 }
 0xb13   :  { %v2792_v7 = vadd.f32 %v1303_v55, %v1299_v56 }
 0xb15   :  { %2079 = vtanh.f32 %v2792_v7 }
 0xb16   :  { %v1377_v28 = vpop.permute.xlu1 %1376  ;;  %2081 = vrcp.f32 %v1370_v41 }
 0xb17   :  { %v2796_v13 = vadd.f32 %v1377_v28, %v1373_v49 }
 0xb19   :  { %2083 = vtanh.f32 %v2796_v13 }
 0xb22   :  { %v2080_v33 = vpop.eup %2079 }
 0xb23   :  { %v2799_v15 = vmul.f32 %v2080_v33, %v2078_v30  ;;  %v2082_v40 = vpop.eup %2081 }
 0xb25   :  { %v1390_v34 = vpack.c.bf16 %v2799_v15, %v2799_v15 }
 0xb26   :  { %v2084_v35 = vpop.eup %2083 }
 0xb27   :  { %1392 = vrot.lane.b32.xlu0 %v1390_v34, %s2308_s4  ;;  %v2804_v11 = vmul.f32 %v2084_v35, %v2082_v40 }
 0xb29   :  { %v1464_v45 = vpack.c.bf16 %v2804_v11, %v2804_v11 }
 0xb2b   :  { %1466 = vrot.lane.b32.xlu1 %v1464_v45, %s2308_s4  ;;  %v2924_v45 = vld [vmem:[#allocation21_spill] sm:$0xff] }
 0xb99   :  { %v1393_v2 = vpop.permute.xlu0 %1392 }
 0xb9a   :  { %1856 = vmatmul.mubr.msk.bf16.vlgmr.msra.gmra.mxu0 %vm421_vm3, %v1393_v2 }
 0xb9b   :  { %1560 = vmatpush1.bf16.msra.mxu0 %v2740_v62  ;;  %1583 = vmatprep.mubr.bf16.mxu0 %v2923_v51 }
 0xb9c   :  { %1561 = vmatprep.subr.bf16.mxu0 %v2744_v37 }
 0xb9d   :  { %v1467_v12 = vpop.permute.xlu1 %1466 }
 0xb9e   :  { %1859 = vmatmul.mubr.msk.bf16.vlgmr.msra.gmra.mxu1 %vm421_vm3, %v1467_v12 }
 0xb9f   :  { %1562 = vmatpush1.bf16.msra.mxu0 %v2748_v10  ;;  %1634 = vmatpush1.bf16.msra.mxu1 %v2751_v60 }
 0xba0   :  { %1563 = vmatprep.subr.bf16.mxu0 %v2754_v16  ;;  %1635 = vmatprep.subr.bf16.mxu1 %v2757_v17 }
 0xba1   :  { %1657 = vmatprep.mubr.bf16.mxu1 %v2923_v51 }
 0xba3   :  { %1564 = vmatpush1.bf16.msra.mxu0 %v2761_v18  ;;  %1636 = vmatpush1.bf16.msra.mxu1 %v2764_v19 }
 0xba4   :  { %1565 = vmatprep.subr.bf16.mxu0 %v2767_v22  ;;  %1637 = vmatprep.subr.bf16.mxu1 %v2770_v23 }
 0xba7   :  { %1566 = vmatpush1.bf16.msra.mxu0 %v2773_v24  ;;  %1638 = vmatpush1.bf16.msra.mxu1 %v2776_v25 }
 0xba8   :  { %1639 = vmatprep.subr.bf16.mxu1 %v2779_v27 }
 0xbab   :  { %1640 = vmatpush1.bf16.msra.mxu1 %v2782_v29 }
 0xc5a   :  { %v1431_v62 = vpop.f32.mrf.mxu0 }
 0xc5b   :  { %v1438_v37 = vadd.f32 %v1431_v62, %v2536_v61 }
 0xc5c   :  { %v1433_v51 = vpop.f32.mrf.mxu0 }
 0xc5d   :  { %v1857_v10 = vmul.f32 -1.442695, %v1438_v37  ;;  %v1439_v25 = vadd.f32 %v1433_v51, %v2542_v6 }
 0xc5e   :  { %v1435_v60 = vpop.f32.mrf.mxu0  ;;  %v1505_v16 = vpop.f32.mrf.mxu1 }
 0xc5f   :  { %2085 = vpow2.f32 %v1857_v10  ;;  %v1512_v17 = vadd.f32 %v1505_v16, %v2484_v59  ;;  %v1858_v6 = vmul.f32 -1.442695, %v1439_v25  ;;  %v2925_v60 = vld [vmem:[#allocation23_spill] sm:$0xff] }
 0xc60   :  { %v1436_v18 = vpop.f32.mrf.mxu0  ;;  %v1507_v19 = vpop.f32.mrf.mxu1 }
 0xc61   :  { %v1860_v22 = vmul.f32 -1.442695, %v1512_v17  ;;  %v1513_v61 = vadd.f32 %v1507_v19, %v2490_v63  ;;  %v2926_v19 = vld [vmem:[#allocation22_spill] sm:$0xff] }
 0xc62   :  { %v1509_v23 = vpop.f32.mrf.mxu1 }
 0xc63   :  { %2087 = vpow2.f32 %v1860_v22  ;;  %v1861_v43 = vmul.f32 -1.442695, %v1513_v61 }
 0xc64   :  { %v1510_v24 = vpop.f32.mrf.mxu1  ;;  %2089 = vtanh.f32 %v1439_v25 }
 0xc6c   :  { %v2086_v27 = vpop.eup %2085 }
 0xc6d   :  { %v1443_v29 = vadd.f32 1.0, %v2086_v27 }
 0xc6f   :  { %2091 = vrcp.f32 %v1443_v29 }
 0xc70   :  { %v2088_v14 = vpop.eup %2087  ;;  %2093 = vtanh.f32 %v1513_v61 }
 0xc71   :  { %v1517_v53 = vadd.f32 1.0, %v2088_v14  ;;  %v2090_v36 = vpop.eup %2089 }
 0xc73   :  { %2095 = vrcp.f32 %v1517_v53 }
 0xc74   :  { %2097 = vpow2.f32 %v1858_v6 }
 0xc75   :  { %2099 = vpow2.f32 %v1861_v43 }
 0xc7c   :  { %v2092_v59 = vpop.eup %2091 }
 0xc7d   :  { %v1454_v44 = vmul.f32 %v2092_v59, %v2090_v36  ;;  %v2094_v39 = vpop.eup %2093  ;;  %v1453_v21 = vmul.f32 %v2092_v59, %v2792_v7 }
 0xc7f   :  { %1456 = vrot.lane.b32.xlu0 %v1454_v44, %s2308_s4 }
 0xc80   :  { %v2096_v31 = vpop.eup %2095 }
 0xc81   :  { %v1528_v26 = vmul.f32 %v2096_v31, %v2094_v39  ;;  %v2098_v63 = vpop.eup %2097  ;;  %v1527_v48 = vmul.f32 %v2096_v31, %v2796_v13 }
 0xc82   :  { %v1450_v54 = vadd.f32 1.0, %v2098_v63  ;;  %v2100_v3 = vpop.eup %2099 }
 0xc83   :  { %1530 = vrot.lane.b32.xlu1 %v1528_v26, %s2308_s4  ;;  %v1524_v42 = vadd.f32 1.0, %v2100_v3 }
 0xc84   :  { %2101 = vrcp.f32 %v1450_v54 }
 0xc91   :  { %v2102_v1 = vpop.eup %2101 }
 0xcf1   :  { %v1457_v4 = vpop.permute.xlu0 %1456 }
 0xcf2   :  { %v2834_v5 = vadd.f32 %v1457_v4, %v1453_v21 }
 0xcf4   :  { %2103 = vtanh.f32 %v2834_v5 }
 0xcf5   :  { %v1531_v0 = vpop.permute.xlu1 %1530  ;;  %2105 = vrcp.f32 %v1524_v42 }
 0xcf6   :  { %v2838_v52 = vadd.f32 %v1531_v0, %v1527_v48 }
 0xcf8   :  { %2107 = vtanh.f32 %v2838_v52 }
 0xd01   :  { %v2104_v8 = vpop.eup %2103 }
 0xd02   :  { %v1461_v47 = vmul.f32 %v2104_v8, %v2102_v1  ;;  %v2106_v50 = vpop.eup %2105 }
 0xd04   :  { %v1544_v56 = vpack.c.bf16 %v1461_v47, %v1461_v47 }
 0xd05   :  { %v2108_v55 = vpop.eup %2107 }
 0xd06   :  { %1546 = vrot.lane.b32.xlu0 %v1544_v56, %s2308_s4  ;;  %v2842_v7 = vmul.f32 %v2108_v55, %v2106_v50 }
 0xd08   :  { %v1618_v41 = vpack.c.bf16 %v2842_v7, %v2842_v7 }
 0xd0a   :  { %1620 = vrot.lane.b32.xlu1 %v1618_v41, %s2308_s4 }
 0xd78   :  { %v1547_v49 = vpop.permute.xlu0 %1546 }
 0xd79   :  { %1862 = vmatmul.mubr.msk.bf16.vlgmr.msra.gmra.mxu0 %vm421_vm3, %v1547_v49 }
 0xd7c   :  { %v1621_v28 = vpop.permute.xlu1 %1620 }
 0xd7d   :  { %1865 = vmatmul.mubr.msk.bf16.vlgmr.msra.gmra.mxu1 %vm421_vm3, %v1621_v28 }
 0xe39   :  { %v1585_v13 = vpop.f32.mrf.mxu0 }
 0xe3a   :  { %v1592_v30 = vadd.f32 %v1585_v13, %v2547_v20 }
 0xe3b   :  { %v1587_v33 = vpop.f32.mrf.mxu0 }
 0xe3c   :  { %v1863_v40 = vmul.f32 -1.442695, %v1592_v30  ;;  %v1593_v16 = vadd.f32 %v1587_v33, %v2925_v60 }
 0xe3d   :  { %v1589_v34 = vpop.f32.mrf.mxu0  ;;  %v1659_v35 = vpop.f32.mrf.mxu1 }
 0xe3e   :  { %2109 = vpow2.f32 %v1863_v40  ;;  %v1666_v2 = vadd.f32 %v1659_v35, %v2924_v45 }
 0xe3f   :  { %v1590_v12 = vpop.f32.mrf.mxu0  ;;  %v1661_v62 = vpop.f32.mrf.mxu1 }
 0xe40   :  { %v1866_v37 = vmul.f32 -1.442695, %v1666_v2  ;;  %v1667_v20 = vadd.f32 %v1661_v62, %v2926_v19 }
 0xe41   :  { %v1663_v51 = vpop.f32.mrf.mxu1 }
 0xe42   :  { %2111 = vpow2.f32 %v1866_v37  ;;  %v1867_v53 = vmul.f32 -1.442695, %v1667_v20 }
 0xe43   :  { %v1664_v10 = vpop.f32.mrf.mxu1  ;;  %2113 = vtanh.f32 %v1593_v16 }
 0xe4b   :  { %v2110_v17 = vpop.eup %2109 }
 0xe4c   :  { %v1597_v18 = vadd.f32 1.0, %v2110_v17 }
 0xe4e   :  { %2115 = vrcp.f32 %v1597_v18 }
 0xe4f   :  { %v2112_v22 = vpop.eup %2111  ;;  %2117 = vtanh.f32 %v1667_v20 }
 0xe50   :  { %v1671_v23 = vadd.f32 1.0, %v2112_v22  ;;  %v2114_v24 = vpop.eup %2113 }
 0xe52   :  { %2119 = vrcp.f32 %v1671_v23 }
 0xe5b   :  { %v2116_v25 = vpop.eup %2115 }
 0xe5c   :  { %v1608_v27 = vmul.f32 %v2116_v25, %v2114_v24  ;;  %v2118_v29 = vpop.eup %2117 }
 0xe5e   :  { %1610 = vrot.lane.b32.xlu0 %v1608_v27, %s2308_s4 }
 0xe5f   :  { %v2120_v61 = vpop.eup %2119 }
 0xe60   :  { %v1682_v14 = vmul.f32 %v2120_v61, %v2118_v29 }
 0xe62   :  { %599 = vrot.lane.b32.xlu0 %v2565_v38, %s2308_s4  ;;  %1684 = vrot.lane.b32.xlu1 %v1682_v14, %s2308_s4  ;;  %v1864_v38 = vmul.f32 -1.442695, %v1593_v16 }
 0xe64   :  { %2121 = vpow2.f32 %v1864_v38 }
 0xe65   :  { %2123 = vpow2.f32 %v1867_v53 }
 0xe66   :  { %915 = vrot.lane.b32.xlu0 %v2647_v32, %s2308_s4  ;;  %757 = vrot.lane.b32.xlu1 %v2606_v58, %s2308_s4  ;;  %v1607_v58 = vmul.f32 %v2116_v25, %v2834_v5 }
 0xe6a   :  { %1229 = vrot.lane.b32.xlu0 %v2729_v57, %s2308_s4  ;;  %1073 = vrot.lane.b32.xlu1 %v2688_v46, %s2308_s4  ;;  %v1681_v46 = vmul.f32 %v2120_v61, %v2838_v52 }
 0xe6e   :  { %1537 = vrot.lane.b32.xlu0 %v1461_v47, %s2308_s4  ;;  %1383 = vrot.lane.b32.xlu1 %v2799_v15, %s2308_s4 }
 0xe71   :  { %v2122_v36 = vpop.eup %2121 }
 0xe72   :  { %v1604_v32 = vadd.f32 1.0, %v2122_v36  ;;  %v2124_v59 = vpop.eup %2123 }
 0xe73   :  { %v1678_v57 = vadd.f32 1.0, %v2124_v59 }
 0xe74   :  { %2125 = vrcp.f32 %v1604_v32 }
 0xe81   :  { %v2126_v3 = vpop.eup %2125 }
 0xed0   :  { %v1611_v44 = vpop.permute.xlu0 %1610 }
 0xed1   :  { %v1613_v39 = vadd.f32 %v1611_v44, %v1607_v58 }
 0xed3   :  { %2127 = vtanh.f32 %v1613_v39 }
 0xed4   :  { %v600_v31 = vpop.permute.xlu0 %599  ;;  %v1685_v26 = vpop.permute.xlu1 %1684  ;;  %2129 = vrcp.f32 %v1678_v57 }
 0xed5   :  { %602 = vst.msk [vmem:[#allocation3] sm:$0xff] %vm421_vm3, %v600_v31  ;;  %v1687_v15 = vadd.f32 %v1685_v26, %v1681_v46 }
 0xed7   :  { %2131 = vtanh.f32 %v1687_v15 }
 0xed8   :  { %v916_v6 = vpop.permute.xlu0 %915  ;;  %v758_v43 = vpop.permute.xlu1 %757 }
 0xed9   :  { %919 = vst.msk [vmem:[#allocation3 + $0x10] sm:$0xff] %vm421_vm3, %v916_v6  ;;  %761 = vst.msk [vmem:[#allocation3 + $0x8] sm:$0xff] %vm421_vm3, %v758_v43 }
 0xeda   :  { %1387 = vst.msk [vmem:[#allocation3 + $0x10] sm:$0xff] %vm604_vm2, %v2804_v11  ;;  %1541 = vst.msk [vmem:[#allocation3 + $0x8] sm:$0xff] %vm604_vm2, %v2842_v7 }
 0xedc   :  { %v1230_v63 = vpop.permute.xlu0 %1229  ;;  %v1074_v54 = vpop.permute.xlu1 %1073 }
 0xedd   :  { %1232 = vst.msk [vmem:[#allocation3 + $0x20] sm:$0xff] %vm421_vm3, %v1230_v63  ;;  %1077 = vst.msk [vmem:[#allocation3 + $0x18] sm:$0xff] %vm421_vm3, %v1074_v54 }
 0xede   :  { %1233 = vst.msk [vmem:[#allocation3 + $0x18] sm:$0xff] %vm604_vm2, %v2734_v9 }
 0xee0   :  { %v2128_v21 = vpop.eup %2127  ;;  %v1538_v4 = vpop.permute.xlu0 %1537 }
 0xee1   :  { %v1384_v5 = vpop.permute.xlu1 %1383  ;;  %1540 = vst.msk [vmem:[#allocation3 + $0x30] sm:$0xff] %vm421_vm3, %v1538_v4  ;;  %v1615_v11 = vmul.f32 %v2128_v21, %v2126_v3  ;;  %v2130_v42 = vpop.eup %2129  ;;  %v1698_v52 = vld [vmem:[#allocation3 + $0x10] sm:$0xff]  ;;  %v1697_v55 = vld [vmem:[#allocation3 + $0x8] sm:$0xff] }
 0xee2   :  { %1386 = vst.msk [vmem:[#allocation3 + $0x28] sm:$0xff] %vm421_vm3, %v1384_v5 }
 0xee3   :  { %1691 = vrot.lane.b32.xlu1 %v1615_v11, %s2308_s4 }
 0xee4   :  { %v2132_v48 = vpop.eup %2131  ;;  %v1700_v9 = vld [vmem:[#allocation3 + $0x20] sm:$0xff] }
 0xee5   :  { %v1689_v0 = vmul.f32 %v2132_v48, %v2130_v42  ;;  %v1699_v1 = vld [vmem:[#allocation3 + $0x18] sm:$0xff] }
 0xee6   :  { %v1876_v8 = vpack.c.bf16 %v1699_v1, %v1698_v52 }
 0xee7   :  { %1728 = vrot.lane.b32.xlu1 %v1613_v39, %s2308_s4  ;;  %1722 = vrot.lane.b32.xlu0 %v1689_v0, %s2308_s4  ;;  %1695 = vst.msk [vmem:[#allocation3] sm:$0xff] %vm604_vm2, %v1689_v0 }
 0xee8   :  { %1888 = vst [vmem:[#allocation12 + $0x8] sm:$0xff] %v1876_v8  }
 0xee9   :  { %v1701_v47 = vld [vmem:[#allocation3 + $0x28] sm:$0xff] }
 0xeea   :  { %v1881_v50 = vpack.c.bf16 %v1701_v47, %v1700_v9 }
 0xeeb   :  { %1733 = vrot.lane.b32.xlu0 %v1687_v15, %s2308_s4 }
 0xeec   :  { %1889 = vst [vmem:[#allocation12 + $0x10] sm:$0xff] %v1881_v50  }
 0xeee   :  { %v1696_v56 = vld [vmem:[#allocation3] sm:$0xff] }
 0xeef   :  { %v1871_v7 = vpack.c.bf16 %v1697_v55, %v1696_v56 }
 0xef1   :  { %1872 = vst [vmem:[#allocation12] sm:$0xff] %v1871_v7  }
 0xf55   :  { %v1692_v41 = vpop.permute.xlu1 %1691 }
 0xf56   :  { %1694 = vst.msk [vmem:[#allocation3 + $0x38] sm:$0xff] %vm421_vm3, %v1692_v41  ;;  %1720 = vst.msk [vmem:[#allocation13] sm:$0xff] %vm421_vm3, %v1692_v41 }
 0xf59   :  { %v1723_v49 = vpop.permute.xlu0 %1722  ;;  %v1729_v28 = vpop.permute.xlu1 %1728 }
 0xf5a   :  { %1726 = vst.msk [vmem:[#allocation13 + $0x8] sm:$0xff] %vm421_vm3, %v1723_v49  ;;  %1731 = vst.msk [vmem:[#allocation15] sm:$0xff] %vm421_vm3, %v1729_v28 }
 0xf5b   :  { %2240 = shalt.err (!%p2237_p10)
}
 0xf5c   :  { %1761 = dma.vmem_to_hbm [thread:$0]  %s1756_s24, 256, %s2916_s6, [#allocation14], %s2303_s11, %s2303_s11, %s2304_s12   ;;  %v1702_v30 = vld [vmem:[#allocation3 + $0x30] sm:$0xff] }
 0xf5d   :  { %v1734_v13 = vpop.permute.xlu0 %1733  ;;  %v1703_v33 = vld [vmem:[#allocation3 + $0x38] sm:$0xff]  ;;  %s2249_s9 = scalar_lea.vmem %s1768_s26, 256  ;;  %p2254_p12 = scmp.lt.s32.totalorder %s1768_s26, %s1768_s26 }
 0xf5e   :  { %1737 = vst.msk [vmem:[#allocation15 + $0x8] sm:$0xff] %vm421_vm3, %v1734_v13  ;;  %v1886_v40 = vpack.c.bf16 %v1703_v33, %v1702_v30  ;;  %p2250_p11 = scmp.ne.s32.totalorder %s1768_s26, %s2249_s9  ;;  %p2255_p13 = scmp.lt.s32.totalorder %s2249_s9, %s2249_s9 }
 0xf60   :  { %p2256_p0 = por %p2255_p13, %p2254_p12 }
 0xf62   :  { %p2257_p1 = pnand %p2256_p0, %p2250_p11 }
 0xf64   :  { %2260 = shalt.err (!%p2257_p1)
}
 0xf65   :  { %1773 = dma.vmem_to_hbm [thread:$0]  %s1768_s26, 256, %s2917_s7, [#allocation14], %s2303_s11, %s2303_s11, %s2304_s12   ;;  %1890 = vst [vmem:[#allocation12 + $0x18] sm:$0xff] %v1886_v40  }
 0xf66   :  { %s2269_s13 = scalar_lea.vmem %s1744_s28, 512  ;;  %p2274_p3 = scmp.lt.s32.totalorder %s1744_s28, %s1744_s28 }
 0xf67   :  { %p2270_p2 = scmp.ne.s32.totalorder %s1744_s28, %s2269_s13  ;;  %p2275_p4 = scmp.lt.s32.totalorder %s2269_s13, %s2269_s13 }
 0xf69   :  { %p2276_p5 = por %p2275_p4, %p2274_p3 }
 0xf6b   :  { %p2277_p6 = pnand %p2276_p5, %p2270_p2 }
 0xf6d   :  { %2280 = shalt.err (!%p2277_p6)
}
 0xf6e   :  { %s2312_s14 = smov 4  }
 0xf6f   :  { %1749 = dma.vmem_to_hbm [thread:$0]  %s1744_s28, 512, %s2915_s5, [#allocation6], %s2308_s4, %s2308_s4, %s2312_s14  }
 0xf70   :  { %2295 = dma.done.wait [#allocation6], 512  }
 0xf71   :  { %2296 = vsyncadd [#allocation6], 4294966784 }
 0xf72   :  { %2297 = dma.done.wait [#allocation14], 512  }
 0xf73   :  { %2298 = vsyncadd [#allocation14], 4294966784 }
 0xf74   :  { %1783 = vsyncpa [#allocation5], 1 }
 0xf75   :  { %1784 = vsyncpa [#allocation8], 1 }
 0xf76   :  { %1785 = vsyncpa [#allocation11], 1 }
 0xf77   :  { %1786 = vsyncpa [#allocation6], 1 }
 0xf78   :  { %1787 = vsyncpa [#allocation14], 1 }

</bundles_post_ra>
